<compile_context>
chip_gen: v5e
topology: v5e:2x2
jax: 0.10.0
libtpu: 0.0.40
codegen_flags: <defaults>
</compile_context>

<pallas_src>
import functools

import jax
import jax.numpy as jnp
from jax import lax
from jax.experimental import pallas as pl
from jax.experimental.pallas import tpu as pltpu


def _round_up(x: int, m: int) -> int:
    return ((x + m - 1) // m) * m


def _gcn_kernel(adj_ref, fadj_ref, xbf_ref, xf32_ref, fxbf_ref,
                inv_down_ref, inv_up_ref, inv_file_ref,
                w_up_ref, w_self_ref, w_down_ref, w_fd_ref, b_out_ref,
                out_ref, down_acc_ref, up_acc_ref):
    f32 = jnp.float32
    i = pl.program_id(0)
    k = pl.program_id(1)
    ni = pl.num_programs(0)
    nk = pl.num_programs(1)
    t = adj_ref.shape[0]                    # square (T, T) adjacency block

    adj_blk = adj_ref[...]                  # (T, T) bf16, read exactly once

    # Transformed exec features (bf16) are resident in VMEM; slice the rows
    # needed for the contraction block k (down) and the row block i (up).
    x_k = xbf_ref[pl.ds(pl.multiple_of(k * t, t), t), :]       # (T, F)
    x_i = xbf_ref[pl.ds(pl.multiple_of(i * t, t), t), :]       # (T, F)

    # ---- down numerator for rows i, accumulated over k (f32 scratch) -------
    down_new = jnp.dot(adj_blk, x_k, preferred_element_type=f32)

    @pl.when(k == 0)
    def _():
        down_acc_ref[...] = down_new

    @pl.when(k != 0)
    def _():
        down_acc_ref[...] = down_acc_ref[...] + down_new

    # ---- up numerator for rows k, accumulated over i.  Contract over dim 0
    # so A_blk.T is never materialized. ---------------------------------------
    dn = (((0,), (0,)), ((), ()))
    up_new = lax.dot_general(adj_blk, x_i, dimension_numbers=dn,
                             preferred_element_type=f32)
    r_k = pl.multiple_of(k * t, t)

    @pl.when(i == 0)
    def _():
        up_acc_ref[pl.ds(r_k, t), :] = up_new

    @pl.when(i != 0)
    def _():
        up_acc_ref[pl.ds(r_k, t), :] = up_acc_ref[pl.ds(r_k, t), :] + up_new

    # ---- finalize self + down + file_down (+ bias) part of output rows i
    # once the contraction over k is complete. --------------------------------
    @pl.when(k == nk - 1)
    def _():
        exec_down = down_acc_ref[...] * inv_down_ref[...]
        exec_self = xf32_ref[...]
        file_down = (jnp.dot(fadj_ref[...], fxbf_ref[...],
                             preferred_element_type=f32) * inv_file_ref[...])
        part = (jnp.dot(exec_self, w_self_ref[...], preferred_element_type=f32)
                + jnp.dot(exec_down, w_down_ref[...], preferred_element_type=f32)
                + jnp.dot(file_down, w_fd_ref[...], preferred_element_type=f32)
                + b_out_ref[...])
        r_i = pl.multiple_of(i * t, t)
        out_ref[pl.ds(r_i, t), :] = part.astype(out_ref.dtype)

    # ---- add the "up" part to output rows k once every row tile i has
    # contributed.  For row block r, the "=" above happens at step (r, nk-1),
    # which always precedes this "+=" at step (ni-1, r) in grid order. --------
    @pl.when(i == ni - 1)
    def _():
        exec_up = up_acc_ref[pl.ds(r_k, t), :] * inv_up_ref[...]
        up_part = jnp.dot(exec_up, w_up_ref[...], preferred_element_type=f32)
        out_ref[pl.ds(r_k, t), :] = (out_ref[pl.ds(r_k, t), :]
                                     + up_part.astype(out_ref.dtype))


@functools.partial(jax.jit, static_argnames=("row_tile",))
def graph_convolution(exec_input, file_input, exec_adj, file_adj, params,
                      *, row_tile=256):
    # torch nn.Linear layout: weight (out, in), bias (out,)
    w_exec, b_exec = params["w_exec"], params["b_exec"]   # (F, EF), (F,)
    w_file, b_file = params["w_file"], params["b_file"]   # (F, FF), (F,)
    w_out, b_out = params["w_out"], params["b_out"]       # (OUT, 4F), (OUT,)

    n_exec = exec_input.shape[0]
    n_file = file_input.shape[0]
    f = w_exec.shape[0]
    out_dim = w_out.shape[0]

    nf_pad = _round_up(n_file, 128)     # lane-dense K for the file aggregation
    out_pad = _round_up(out_dim, 128)   # lane-dense, unmasked output stores

    # --- pick the square adjacency tile T (trace-time, static) --------------
    vmem_budget = 48 * 1024 * 1024      # safe on v5e/v6e (128 MiB) and v7x (64 MiB)
    t = min(int(row_tile), _round_up(n_exec, 128))
    t = max(128, (t // 128) * 128)
    while t > 128:
        # T-scaling pieces (double-buffered): adj block, file_adj row slab,
        # f32 self slab; plus the down accumulator.
        t_bytes = 2 * (t * t * 2 + t * nf_pad * 2 + t * f * 4) + t * f * 4
        if t_bytes <= vmem_budget // 4:
            break
        t -= 128
    n_pad = _round_up(n_exec, t)
    n_tiles = n_pad // t

    # --- feature transforms + degree reciprocals once, in the wrapper -------
    exec_x = exec_input @ w_exec.T + b_exec                  # (N_exec, F) f32
    file_x = file_input @ w_file.T + b_file                  # (N_file, F) f32
    exec_x_f32 = jnp.pad(exec_x, ((0, n_pad - n_exec), (0, 0)))
    file_x_p = jnp.pad(file_x, ((0, nf_pad - n_file), (0, 0)))
    exec_x_bf = exec_x_f32.astype(jnp.bfloat16)
    file_x_bf = file_x_p.astype(jnp.bfloat16)

    # Exact f32 reciprocals of (degree + 1e-20); padded rows get factor 0.
    inv_down = 1.0 / (jnp.sum(exec_adj, axis=1) + 1e-20)     # rowsum(A)
    inv_up = 1.0 / (jnp.sum(exec_adj, axis=0) + 1e-20)       # rowsum(A.T)
    inv_file = 1.0 / (jnp.sum(file_adj, axis=1) + 1e-20)     # rowsum(Af)

    def _pad_col(v):
        return jnp.pad(v.astype(jnp.float32), (0, n_pad - n_exec)).reshape(-1, 1)

    inv_down, inv_up, inv_file = (_pad_col(v) for v in (inv_down, inv_up, inv_file))

    # Adjacency in bf16 (exact for 0/1 graphs); every element is streamed once.
    adj_p = jnp.pad(exec_adj, ((0, n_pad - n_exec),
                               (0, n_pad - n_exec))).astype(jnp.bfloat16)
    fadj_p = jnp.pad(file_adj, ((0, n_pad - n_exec),
                                (0, nf_pad - n_file))).astype(jnp.bfloat16)

    # Output weight, pre-transposed and split per concat slot:
    # combine = [up, self, down, file_down]  ->  out = sum_slot slot @ W_slot + b.
    w_out_t = w_out.T                                        # (4F, OUT)

    def _w_slice(s):
        return jnp.pad(w_out_t[s * f:(s + 1) * f],
                       ((0, 0), (0, out_pad - out_dim)))

    w_up_s, w_self_s, w_down_s, w_fd_s = (_w_slice(s) for s in range(4))
    b_out2 = jnp.pad(b_out, (0, out_pad - out_dim)).reshape(1, -1)

    def _const(arr):
        return pl.BlockSpec(arr.shape, lambda i, k: (0,) * arr.ndim)

    in_specs = [
        pl.BlockSpec((t, t), lambda i, k: (i, k)),        # exec_adj block (read once)
        pl.BlockSpec((t, nf_pad), lambda i, k: (i, 0)),   # file_adj row slab
        _const(exec_x_bf),                                # exec features bf16, resident
        pl.BlockSpec((t, f), lambda i, k: (i, 0)),        # exec features f32 (self slot)
        _const(file_x_bf),                                # file features bf16, resident
        pl.BlockSpec((t, 1), lambda i, k: (i, 0)),        # 1/(rowsum(A)+eps)
        pl.BlockSpec((t, 1), lambda i, k: (k, 0)),        # 1/(colsum(A)+eps)
        pl.BlockSpec((t, 1), lambda i, k: (i, 0)),        # 1/(rowsum(Af)+eps)
        _const(w_up_s), _const(w_self_s), _const(w_down_s), _const(w_fd_s),
        _const(b_out2),
    ]
    # Output resident in VMEM (constant index map): written piecewise during the
    # grid, DMA'd back to HBM once at the end.
    out_specs = pl.BlockSpec((n_pad, out_pad), lambda i, k: (0, 0))
    scratch_shapes = [pltpu.VMEM((t, f), jnp.float32),        # down numerator (rows i)
                      pltpu.VMEM((n_pad, f), jnp.float32)]    # up numerator (all rows)

    # Cost hint: each adjacency element is read once; constant-index blocks once.
    flops = (4 * n_pad * n_pad * f            # A@x and A^T@x
             + 2 * n_pad * nf_pad * f         # Af@xf
             + 2 * n_pad * 4 * f * out_pad)   # output projection
    bytes_accessed = (n_pad * n_pad * 2 + n_pad * nf_pad * 2
                      + n_pad * f * (2 + 4) + nf_pad * f * 2
                      + 3 * n_pad * 4
                      + 4 * f * out_pad * 4 + out_pad * 4
                      + n_pad * out_pad * 4)
    cost = pl.CostEstimate(flops=flops, transcendentals=0,
                           bytes_accessed=bytes_accessed)

    out_padded = pl.pallas_call(
        _gcn_kernel,
        out_shape=jax.ShapeDtypeStruct((n_pad, out_pad), jnp.float32),
        grid=(n_tiles, n_tiles),
        in_specs=in_specs,
        out_specs=out_specs,
        scratch_shapes=scratch_shapes,
        compiler_params=pltpu.CompilerParams(
            # Both axes accumulate into resident scratch / the resident output,
            # so neither may be sharded across TensorCores.
            dimension_semantics=("arbitrary", "arbitrary"),
            vmem_limit_bytes=vmem_budget),
        cost_estimate=cost,
    )(adj_p, fadj_p, exec_x_bf, exec_x_f32, file_x_bf,
      inv_down, inv_up, inv_file,
      w_up_s, w_self_s, w_down_s, w_fd_s, b_out2)

    return out_padded[:n_exec, :out_dim]


def _reference(exec_input, file_input, exec_adj, file_adj, params):
    # Pure-JAX f32 reference mirroring the PyTorch forward exactly.
    exec_x = exec_input @ params["w_exec"].T + params["b_exec"]
    exec_down = (exec_adj @ exec_x) / (exec_adj.sum(axis=1)[:, None] + 1e-20)
    exec_adj_t = exec_adj.T
    exec_up = (exec_adj_t @ exec_x) / (exec_adj_t.sum(axis=1)[:, None] + 1e-20)
    file_x = file_input @ params["w_file"].T + params["b_file"]
    file_down = (file_adj @ file_x) / (file_adj.sum(axis=1)[:, None] + 1e-20)
    combine = jnp.concatenate([exec_up, exec_x, exec_down, file_down], axis=1)
    return combine @ params["w_out"].T + params["b_out"]


if __name__ == "__main__":
    # Shapes consistent with the module's forward:
    #   exec_input: (N_exec, exec_feature_dim)
    #   file_input: (N_file, file_feature_dim)
    #   exec_adj:   (N_exec, N_exec)
    #   file_adj:   (N_exec, N_file)
    # TODO(synk): adj_process (Laplacian preprocessing) is not part of forward()
    # and is not implemented here.
    N_EXEC, N_FILE = 16, 12
    EXEC_FDIM, FILE_FDIM = 8, 6
    IN_FDIM, OUT_FDIM = 32, 16

    key = jax.random.PRNGKey(0)
    keys = jax.random.split(key, 10)

    exec_input = jax.random.normal(keys[0], (N_EXEC, EXEC_FDIM), jnp.float32)
    file_input = jax.random.normal(keys[1], (N_FILE, FILE_FDIM), jnp.float32)
    exec_adj = (jax.random.uniform(keys[2], (N_EXEC, N_EXEC)) > 0.7).astype(jnp.float32)
    file_adj = (jax.random.uniform(keys[3], (N_EXEC, N_FILE)) > 0.7).astype(jnp.float32)

    # torch nn.Linear layout: weight (out, in), bias (out,)
    params = {
        "w_exec": jax.random.normal(keys[4], (IN_FDIM, EXEC_FDIM), jnp.float32) * 0.1,
        "b_exec": jax.random.normal(keys[5], (IN_FDIM,), jnp.float32) * 0.1,
        "w_file": jax.random.normal(keys[6], (IN_FDIM, FILE_FDIM), jnp.float32) * 0.1,
        "b_file": jax.random.normal(keys[7], (IN_FDIM,), jnp.float32) * 0.1,
        "w_out": jax.random.normal(keys[8], (OUT_FDIM, IN_FDIM * 4), jnp.float32) * 0.1,
        "b_out": jax.random.normal(keys[9], (OUT_FDIM,), jnp.float32) * 0.1,
    }

    out = graph_convolution(exec_input, file_input, exec_adj, file_adj, params)
    out = jax.block_until_ready(out)

    ref = _reference(exec_input, file_input, exec_adj, file_adj, params)
    assert out.shape == (N_EXEC, OUT_FDIM)
    # Tolerance accounts for bf16 MXU operands on the aggregation matmuls;
    # accumulation, degrees and normalization are exact f32.
    assert jnp.allclose(out, ref, atol=2e-2, rtol=2e-2), "mismatch vs reference"

    print("KERNEL_OK")
</pallas_src>

<mosaic_0001>
module attributes {stable_mosaic.version = 11 : i64} {
  func.func @_gcn_kernel(%arg0: i32, %arg1: i32, %arg2: memref<128x128xbf16, #tpu.memory_space<vmem>>, %arg3: memref<128x128xbf16, #tpu.memory_space<vmem>>, %arg4: memref<128x32xbf16, #tpu.memory_space<vmem>>, %arg5: memref<128x32xf32, #tpu.memory_space<vmem>>, %arg6: memref<128x32xbf16, #tpu.memory_space<vmem>>, %arg7: memref<128x1xf32, #tpu.memory_space<vmem>>, %arg8: memref<128x1xf32, #tpu.memory_space<vmem>>, %arg9: memref<128x1xf32, #tpu.memory_space<vmem>>, %arg10: memref<32x128xf32, #tpu.memory_space<vmem>>, %arg11: memref<32x128xf32, #tpu.memory_space<vmem>>, %arg12: memref<32x128xf32, #tpu.memory_space<vmem>>, %arg13: memref<32x128xf32, #tpu.memory_space<vmem>>, %arg14: memref<1x128xf32, #tpu.memory_space<vmem>>, %arg15: memref<128x128xf32, #tpu.memory_space<vmem>>, %arg16: memref<128x32xf32, #tpu.memory_space<vmem>>, %arg17: memref<128x32xf32, #tpu.memory_space<vmem>>) attributes {dimension_semantics = [#tpu.dimension_semantics<arbitrary>, #tpu.dimension_semantics<arbitrary>], iteration_bounds = array<i64: 1, 1>, scalar_prefetch = 0 : i64, scratch_operands = 2 : i64, tpu.core_type = #tpu.core_type<tc>, window_params = [{transform_indices = @transform_0, window_bounds = array<i64: 128, 128>}, {transform_indices = @transform_1, window_bounds = array<i64: 128, 128>}, {pipeline_mode = #tpu.pipeline_mode<synchronous>, transform_indices = @transform_2, window_bounds = array<i64: 128, 32>}, {transform_indices = @transform_3, window_bounds = array<i64: 128, 32>}, {pipeline_mode = #tpu.pipeline_mode<synchronous>, transform_indices = @transform_4, window_bounds = array<i64: 128, 32>}, {transform_indices = @transform_5, window_bounds = array<i64: 128, 1>}, {transform_indices = @transform_6, window_bounds = array<i64: 128, 1>}, {transform_indices = @transform_7, window_bounds = array<i64: 128, 1>}, {pipeline_mode = #tpu.pipeline_mode<synchronous>, transform_indices = @transform_8, window_bounds = array<i64: 32, 128>}, {pipeline_mode = #tpu.pipeline_mode<synchronous>, transform_indices = @transform_9, window_bounds = array<i64: 32, 128>}, {pipeline_mode = #tpu.pipeline_mode<synchronous>, transform_indices = @transform_10, window_bounds = array<i64: 32, 128>}, {pipeline_mode = #tpu.pipeline_mode<synchronous>, transform_indices = @transform_11, window_bounds = array<i64: 32, 128>}, {pipeline_mode = #tpu.pipeline_mode<synchronous>, transform_indices = @transform_12, window_bounds = array<i64: 1, 128>}, {pipeline_mode = #tpu.pipeline_mode<synchronous>, transform_indices = @transform_13, window_bounds = array<i64: 128, 128>}]} {
    %c0 = arith.constant 0 : index
    %c0_0 = arith.constant 0 : index
    %0 = vector.load %arg2[%c0, %c0_0] : memref<128x128xbf16, #tpu.memory_space<vmem>>, vector<128x128xbf16>
    %c128_i32 = arith.constant 128 : i32
    %1 = arith.muli %arg1, %c128_i32 : i32
    %2 = tpu.assume_multiple %1, 128 : i32
    %3 = arith.index_cast %2 : i32 to index
    %c0_1 = arith.constant 0 : index
    %4 = vector.load %arg4[%3, %c0_1] : memref<128x32xbf16, #tpu.memory_space<vmem>>, vector<128x32xbf16>
    %c128_i32_2 = arith.constant 128 : i32
    %5 = arith.muli %arg0, %c128_i32_2 : i32
    %6 = tpu.assume_multiple %5, 128 : i32
    %7 = arith.index_cast %6 : i32 to index
    %c0_3 = arith.constant 0 : index
    %8 = vector.load %arg4[%7, %c0_3] : memref<128x32xbf16, #tpu.memory_space<vmem>>, vector<128x32xbf16>
    %cst = arith.constant dense<0.000000e+00> : vector<128x32xf32>
    %9 = tpu.matmul %0, %4, %cst {dimension_numbers = #tpu.dot_dimension_numbers<[1], [0], [0], [1], [0, 0, 1, 1], [], []>} : vector<128x128xbf16>, vector<128x32xbf16>, vector<128x32xf32> -> vector<128x32xf32>
    %c0_i32 = arith.constant 0 : i32
    %10 = arith.cmpi eq, %arg1, %c0_i32 : i32
    %11 = arith.extui %10 : i1 to i32
    %c0_i32_4 = arith.constant 0 : i32
    %12 = arith.cmpi ne, %11, %c0_i32_4 : i32
    scf.if %12 {
      %c0_17 = arith.constant 0 : index
      %c0_18 = arith.constant 0 : index
      %31 = vector.load %arg16[%c0_17, %c0_18] : memref<128x32xf32, #tpu.memory_space<vmem>>, vector<128x32xf32>
      tpu.vector_store %arg16[%c0_17, %c0_18], %9 {strides = array<i32>} : memref<128x32xf32, #tpu.memory_space<vmem>>, vector<128x32xf32>,
    } else {
    }
    %c0_i32_5 = arith.constant 0 : i32
    %13 = arith.cmpi ne, %arg1, %c0_i32_5 : i32
    %14 = arith.extui %13 : i1 to i32
    %c0_i32_6 = arith.constant 0 : i32
    %15 = arith.cmpi ne, %14, %c0_i32_6 : i32
    scf.if %15 {
      %c0_17 = arith.constant 0 : index
      %c0_18 = arith.constant 0 : index
      %31 = vector.load %arg16[%c0_17, %c0_18] : memref<128x32xf32, #tpu.memory_space<vmem>>, vector<128x32xf32>
      %32 = arith.addf %31, %9 : vector<128x32xf32>
      %c0_19 = arith.constant 0 : index
      %c0_20 = arith.constant 0 : index
      %33 = vector.load %arg16[%c0_19, %c0_20] : memref<128x32xf32, #tpu.memory_space<vmem>>, vector<128x32xf32>
      tpu.vector_store %arg16[%c0_19, %c0_20], %32 {strides = array<i32>} : memref<128x32xf32, #tpu.memory_space<vmem>>, vector<128x32xf32>,
    } else {
    }
    %cst_7 = arith.constant dense<0.000000e+00> : vector<128x32xf32>
    %16 = tpu.matmul %0, %8, %cst_7 {dimension_numbers = #tpu.dot_dimension_numbers<[0], [0], [1], [1], [0, 1, 1, 1], [], []>} : vector<128x128xbf16>, vector<128x32xbf16>, vector<128x32xf32> -> vector<128x32xf32>
    %c128_i32_8 = arith.constant 128 : i32
    %17 = arith.muli %arg1, %c128_i32_8 : i32
    %18 = tpu.assume_multiple %17, 128 : i32
    %c0_i32_9 = arith.constant 0 : i32
    %19 = arith.cmpi eq, %arg0, %c0_i32_9 : i32
    %20 = arith.extui %19 : i1 to i32
    %c0_i32_10 = arith.constant 0 : i32
    %21 = arith.cmpi ne, %20, %c0_i32_10 : i32
    scf.if %21 {
      %31 = arith.index_cast %18 : i32 to index
      %c0_17 = arith.constant 0 : index
      %32 = vector.load %arg17[%31, %c0_17] : memref<128x32xf32, #tpu.memory_space<vmem>>, vector<128x32xf32>
      tpu.vector_store %arg17[%31, %c0_17], %16 {strides = array<i32>} : memref<128x32xf32, #tpu.memory_space<vmem>>, vector<128x32xf32>,
    } else {
    }
    %c0_i32_11 = arith.constant 0 : i32
    %22 = arith.cmpi ne, %arg0, %c0_i32_11 : i32
    %23 = arith.extui %22 : i1 to i32
    %c0_i32_12 = arith.constant 0 : i32
    %24 = arith.cmpi ne, %23, %c0_i32_12 : i32
    scf.if %24 {
      %31 = arith.index_cast %18 : i32 to index
      %c0_17 = arith.constant 0 : index
      %32 = vector.load %arg17[%31, %c0_17] : memref<128x32xf32, #tpu.memory_space<vmem>>, vector<128x32xf32>
      %33 = arith.addf %32, %16 : vector<128x32xf32>
      %34 = arith.index_cast %18 : i32 to index
      %c0_18 = arith.constant 0 : index
      %35 = vector.load %arg17[%34, %c0_18] : memref<128x32xf32, #tpu.memory_space<vmem>>, vector<128x32xf32>
      tpu.vector_store %arg17[%34, %c0_18], %33 {strides = array<i32>} : memref<128x32xf32, #tpu.memory_space<vmem>>, vector<128x32xf32>,
    } else {
    }
    %c0_i32_13 = arith.constant 0 : i32
    %25 = arith.cmpi eq, %arg1, %c0_i32_13 : i32
    %26 = arith.extui %25 : i1 to i32
    %c0_i32_14 = arith.constant 0 : i32
    %27 = arith.cmpi ne, %26, %c0_i32_14 : i32
    scf.if %27 {
      %c0_17 = arith.constant 0 : index
      %c0_18 = arith.constant 0 : index
      %31 = vector.load %arg16[%c0_17, %c0_18] : memref<128x32xf32, #tpu.memory_space<vmem>>, vector<128x32xf32>
      %c0_19 = arith.constant 0 : index
      %c0_20 = arith.constant 0 : index
      %32 = vector.load %arg7[%c0_19, %c0_20] : memref<128x1xf32, #tpu.memory_space<vmem>>, vector<128x1xf32>
      %33 = vector.broadcast %32 : vector<128x1xf32> to vector<128x32xf32>
      %34 = arith.mulf %31, %33 : vector<128x32xf32>
      %c0_21 = arith.constant 0 : index
      %c0_22 = arith.constant 0 : index
      %35 = vector.load %arg5[%c0_21, %c0_22] : memref<128x32xf32, #tpu.memory_space<vmem>>, vector<128x32xf32>
      %c0_23 = arith.constant 0 : index
      %c0_24 = arith.constant 0 : index
      %36 = vector.load %arg3[%c0_23, %c0_24] : memref<128x128xbf16, #tpu.memory_space<vmem>>, vector<128x128xbf16>
      %c0_25 = arith.constant 0 : index
      %c0_26 = arith.constant 0 : index
      %37 = vector.load %arg6[%c0_25, %c0_26] : memref<128x32xbf16, #tpu.memory_space<vmem>>, vector<128x32xbf16>
      %cst_27 = arith.constant dense<0.000000e+00> : vector<128x32xf32>
      %38 = tpu.matmul %36, %37, %cst_27 {dimension_numbers = #tpu.dot_dimension_numbers<[1], [0], [0], [1], [0, 0, 1, 1], [], []>} : vector<128x128xbf16>, vector<128x32xbf16>, vector<128x32xf32> -> vector<128x32xf32>
      %c0_28 = arith.constant 0 : index
      %c0_29 = arith.constant 0 : index
      %39 = vector.load %arg9[%c0_28, %c0_29] : memref<128x1xf32, #tpu.memory_space<vmem>>, vector<128x1xf32>
      %40 = vector.broadcast %39 : vector<128x1xf32> to vector<128x32xf32>
      %41 = arith.mulf %38, %40 : vector<128x32xf32>
      %c0_30 = arith.constant 0 : index
      %c0_31 = arith.constant 0 : index
      %42 = vector.load %arg11[%c0_30, %c0_31] : memref<32x128xf32, #tpu.memory_space<vmem>>, vector<32x128xf32>
      %cst_32 = arith.constant dense<0.000000e+00> : vector<128x128xf32>
      %43 = tpu.matmul %35, %42, %cst_32 {dimension_numbers = #tpu.dot_dimension_numbers<[1], [0], [0], [1], [0, 0, 1, 1], [], []>} : vector<128x32xf32>, vector<32x128xf32>, vector<128x128xf32> -> vector<128x128xf32>
      %c0_33 = arith.constant 0 : index
      %c0_34 = arith.constant 0 : index
      %44 = vector.load %arg12[%c0_33, %c0_34] : memref<32x128xf32, #tpu.memory_space<vmem>>, vector<32x128xf32>
      %cst_35 = arith.constant dense<0.000000e+00> : vector<128x128xf32>
      %45 = tpu.matmul %34, %44, %cst_35 {dimension_numbers = #tpu.dot_dimension_numbers<[1], [0], [0], [1], [0, 0, 1, 1], [], []>} : vector<128x32xf32>, vector<32x128xf32>, vector<128x128xf32> -> vector<128x128xf32>
      %46 = arith.addf %43, %45 : vector<128x128xf32>
      %c0_36 = arith.constant 0 : index
      %c0_37 = arith.constant 0 : index
      %47 = vector.load %arg13[%c0_36, %c0_37] : memref<32x128xf32, #tpu.memory_space<vmem>>, vector<32x128xf32>
      %cst_38 = arith.constant dense<0.000000e+00> : vector<128x128xf32>
      %48 = tpu.matmul %41, %47, %cst_38 {dimension_numbers = #tpu.dot_dimension_numbers<[1], [0], [0], [1], [0, 0, 1, 1], [], []>} : vector<128x32xf32>, vector<32x128xf32>, vector<128x128xf32> -> vector<128x128xf32>
      %49 = arith.addf %46, %48 : vector<128x128xf32>
      %c0_39 = arith.constant 0 : index
      %c0_40 = arith.constant 0 : index
      %50 = vector.load %arg14[%c0_39, %c0_40] : memref<1x128xf32, #tpu.memory_space<vmem>>, vector<1x128xf32>
      %51 = vector.broadcast %50 : vector<1x128xf32> to vector<128x128xf32>
      %52 = arith.addf %49, %51 : vector<128x128xf32>
      %c128_i32_41 = arith.constant 128 : i32
      %53 = arith.muli %arg0, %c128_i32_41 : i32
      %54 = tpu.assume_multiple %53, 128 : i32
      %55 = arith.index_cast %54 : i32 to index
      %c0_42 = arith.constant 0 : index
      %56 = vector.load %arg15[%55, %c0_42] : memref<128x128xf32, #tpu.memory_space<vmem>>, vector<128x128xf32>
      tpu.vector_store %arg15[%55, %c0_42], %52 {strides = array<i32>} : memref<128x128xf32, #tpu.memory_space<vmem>>, vector<128x128xf32>,
    } else {
    }
    %c0_i32_15 = arith.constant 0 : i32
    %28 = arith.cmpi eq, %arg0, %c0_i32_15 : i32
    %29 = arith.extui %28 : i1 to i32
    %c0_i32_16 = arith.constant 0 : i32
    %30 = arith.cmpi ne, %29, %c0_i32_16 : i32
    scf.if %30 {
      %31 = arith.index_cast %18 : i32 to index
      %c0_17 = arith.constant 0 : index
      %32 = vector.load %arg17[%31, %c0_17] : memref<128x32xf32, #tpu.memory_space<vmem>>, vector<128x32xf32>
      %c0_18 = arith.constant 0 : index
      %c0_19 = arith.constant 0 : index
      %33 = vector.load %arg8[%c0_18, %c0_19] : memref<128x1xf32, #tpu.memory_space<vmem>>, vector<128x1xf32>
      %34 = vector.broadcast %33 : vector<128x1xf32> to vector<128x32xf32>
      %35 = arith.mulf %32, %34 : vector<128x32xf32>
      %c0_20 = arith.constant 0 : index
      %c0_21 = arith.constant 0 : index
      %36 = vector.load %arg10[%c0_20, %c0_21] : memref<32x128xf32, #tpu.memory_space<vmem>>, vector<32x128xf32>
      %cst_22 = arith.constant dense<0.000000e+00> : vector<128x128xf32>
      %37 = tpu.matmul %35, %36, %cst_22 {dimension_numbers = #tpu.dot_dimension_numbers<[1], [0], [0], [1], [0, 0, 1, 1], [], []>} : vector<128x32xf32>, vector<32x128xf32>, vector<128x128xf32> -> vector<128x128xf32>
      %38 = arith.index_cast %18 : i32 to index
      %c0_23 = arith.constant 0 : index
      %39 = vector.load %arg15[%38, %c0_23] : memref<128x128xf32, #tpu.memory_space<vmem>>, vector<128x128xf32>
      %40 = arith.addf %39, %37 : vector<128x128xf32>
      %41 = arith.index_cast %18 : i32 to index
      %c0_24 = arith.constant 0 : index
      %42 = vector.load %arg15[%41, %c0_24] : memref<128x128xf32, #tpu.memory_space<vmem>>, vector<128x128xf32>
      tpu.vector_store %arg15[%41, %c0_24], %40 {strides = array<i32>} : memref<128x128xf32, #tpu.memory_space<vmem>>, vector<128x128xf32>,
    } else {
    }
    return
  }
  func.func @transform_0(%arg0: i32, %arg1: i32) -> (i32, i32) {
    %c0_i32 = arith.constant 0 : i32
    return %arg0, %arg1 : i32, i32
  }
  func.func @transform_1(%arg0: i32, %arg1: i32) -> (i32, i32) {
    %c0_i32 = arith.constant 0 : i32
    %c0_i32_0 = arith.constant 0 : i32
    return %arg0, %c0_i32 : i32, i32
  }
  func.func @transform_2(%arg0: i32, %arg1: i32) -> (i32, i32) {
    %c0_i32 = arith.constant 0 : i32
    %c0_i32_0 = arith.constant 0 : i32
    %c0_i32_1 = arith.constant 0 : i32
    return %c0_i32, %c0_i32_0 : i32, i32
  }
  func.func @transform_3(%arg0: i32, %arg1: i32) -> (i32, i32) {
    %c0_i32 = arith.constant 0 : i32
    %c0_i32_0 = arith.constant 0 : i32
    return %arg0, %c0_i32 : i32, i32
  }
  func.func @transform_4(%arg0: i32, %arg1: i32) -> (i32, i32) {
    %c0_i32 = arith.constant 0 : i32
    %c0_i32_0 = arith.constant 0 : i32
    %c0_i32_1 = arith.constant 0 : i32
    return %c0_i32, %c0_i32_0 : i32, i32
  }
  func.func @transform_5(%arg0: i32, %arg1: i32) -> (i32, i32) {
    %c0_i32 = arith.constant 0 : i32
    %c0_i32_0 = arith.constant 0 : i32
    return %arg0, %c0_i32 : i32, i32
  }
  func.func @transform_6(%arg0: i32, %arg1: i32) -> (i32, i32) {
    %c0_i32 = arith.constant 0 : i32
    %c0_i32_0 = arith.constant 0 : i32
    return %arg1, %c0_i32 : i32, i32
  }
  func.func @transform_7(%arg0: i32, %arg1: i32) -> (i32, i32) {
    %c0_i32 = arith.constant 0 : i32
    %c0_i32_0 = arith.constant 0 : i32
    return %arg0, %c0_i32 : i32, i32
  }
  func.func @transform_8(%arg0: i32, %arg1: i32) -> (i32, i32) {
    %c0_i32 = arith.constant 0 : i32
    %c0_i32_0 = arith.constant 0 : i32
    %c0_i32_1 = arith.constant 0 : i32
    return %c0_i32, %c0_i32_0 : i32, i32
  }
  func.func @transform_9(%arg0: i32, %arg1: i32) -> (i32, i32) {
    %c0_i32 = arith.constant 0 : i32
    %c0_i32_0 = arith.constant 0 : i32
    %c0_i32_1 = arith.constant 0 : i32
    return %c0_i32, %c0_i32_0 : i32, i32
  }
  func.func @transform_10(%arg0: i32, %arg1: i32) -> (i32, i32) {
    %c0_i32 = arith.constant 0 : i32
    %c0_i32_0 = arith.constant 0 : i32
    %c0_i32_1 = arith.constant 0 : i32
    return %c0_i32, %c0_i32_0 : i32, i32
  }
  func.func @transform_11(%arg0: i32, %arg1: i32) -> (i32, i32) {
    %c0_i32 = arith.constant 0 : i32
    %c0_i32_0 = arith.constant 0 : i32
    %c0_i32_1 = arith.constant 0 : i32
    return %c0_i32, %c0_i32_0 : i32, i32
  }
  func.func @transform_12(%arg0: i32, %arg1: i32) -> (i32, i32) {
    %c0_i32 = arith.constant 0 : i32
    %c0_i32_0 = arith.constant 0 : i32
    %c0_i32_1 = arith.constant 0 : i32
    return %c0_i32, %c0_i32_0 : i32, i32
  }
  func.func @transform_13(%arg0: i32, %arg1: i32) -> (i32, i32) {
    %c0_i32 = arith.constant 0 : i32
    %c0_i32_0 = arith.constant 0 : i32
    %c0_i32_1 = arith.constant 0 : i32
    return %c0_i32, %c0_i32_0 : i32, i32
  }
}

</mosaic_0001>

<bundles_post_ra>
// kernel: graph_convolution.1
= control target key start
LH: loop header
LB: loop body
LE: loop exit
PB: predicated region body
PF: predicated region fallthrough
CT: control target
= control target key end

     0   :  { %v1947_v2 = vmov 0   ;;  %vm251_vm0 = vcmask 261120   ;;  %s2652_s2 = inlined_call_operand.vmem [shape: bf16[128,32], index: 2, kind: input, shape index: {}]   ;;  %s2653_s0 = inlined_call_operand.vmem [shape: bf16[128,128], index: 0, kind: input, shape index: {}]   ;;  %s2654_s5 = inlined_call_operand.vmem [shape: f32[128,1], index: 5, kind: input, shape index: {}]   ;;  %s2655_s7 = inlined_call_operand.vmem [shape: f32[128,1], index: 7, kind: input, shape index: {}]   ;;  %s2656_s6 = inlined_call_operand.vmem [shape: f32[128,1], index: 6, kind: input, shape index: {}]   ;;  %s2657_s10 = inlined_call_operand.vmem [shape: f32[32,128], index: 10, kind: input, shape index: {}]   ;;  %s2658_s4 = inlined_call_operand.vmem [shape: bf16[128,32], index: 4, kind: input, shape index: {}]   ;;  %s2659_s9 = inlined_call_operand.vmem [shape: f32[32,128], index: 9, kind: input, shape index: {}]   ;;  %s2660_s8 = inlined_call_operand.vmem [shape: f32[32,128], index: 8, kind: input, shape index: {}]   ;;  %s2661_s3 = inlined_call_operand.vmem [shape: f32[128,32], index: 3, kind: input, shape index: {}]   ;;  %s2662_s1 = inlined_call_operand.vmem [shape: bf16[128,128], index: 1, kind: input, shape index: {}]   ;;  %s2663_s11 = inlined_call_operand.vmem [shape: f32[32,128], index: 11, kind: input, shape index: {}]   ;;  %s2664_s12 = inlined_call_operand.vmem [shape: f32[1,128], index: 12, kind: input, shape index: {}]   ;;  %s2665_s13 = inlined_call_operand.vmem [shape: f32[128,128], index: 13, kind: output, shape index: {}]  }
   0x1   :  { %v1897_v0 = vld [vmem:[%s2652_s2 + $0x38] sm:$0xff]  ;;  %v1882_v1 = vld [vmem:[%s2653_s0] sm:$0xff]  ;;  %1943 = vset.pattern.permute.xlu1 %v1947_v2  ;;  %1944 = vset.pattern.permute.xlu2 %v1947_v2  ;;  %v530_v3 = vld [vmem:[%s2654_s5 + $0x8] sm:$0xff] }
   0x2   :  { %198 = vmatpush.bf16.msra.mxu0 %v1897_v0  ;;  %321 = vxpose.xlu0.c.b16.start [1/8] %v1882_v1, 128  ;;  %v1896_v4 = vld [vmem:[%s2652_s2 + $0x30] sm:$0xff]  ;;  %v532_v5 = vld [vmem:[%s2654_s5 + $0x18] sm:$0xff]  ;;  %v1895_v6 = vld [vmem:[%s2652_s2 + $0x28] sm:$0xff] }
   0x3   :  { %552 = vperm.xlu1 %1943, %v530_v3   ;;  %1922 = vmatpush.bf16.msra.mxu2 %v1897_v0  ;;  %v531_v7 = vld [vmem:[%s2654_s5 + $0x10] sm:$0xff]  ;;  %v1894_v8 = vld [vmem:[%s2652_s2 + $0x20] sm:$0xff]  ;;  %v1893_v9 = vld [vmem:[%s2652_s2 + $0x18] sm:$0xff] }
   0x4   :  { %562 = vperm.xlu2 %1944, %v532_v5   ;;  %v1883_v10 = vld [vmem:[%s2653_s0 + $0x8] sm:$0xff]  ;;  %v1892_v12 = vld [vmem:[%s2652_s2 + $0x10] sm:$0xff]  ;;  %v533_v13 = vld [vmem:[%s2654_s5 + $0x20] sm:$0xff] }
   0x5   :  { %v534_v11 = vld [vmem:[%s2654_s5 + $0x28] sm:$0xff]  ;;  %v536_v15 = vld [vmem:[%s2654_s5 + $0x38] sm:$0xff]  ;;  %v535_v16 = vld [vmem:[%s2654_s5 + $0x30] sm:$0xff] }
   0x6   :  { %199 = vmatpush.bf16.msra.mxu0 %v1896_v4  ;;  %v1891_v14 = vld [vmem:[%s2652_s2 + $0x8] sm:$0xff]  ;;  %v1890_v17 = vld [vmem:[%s2652_s2] sm:$0xff]  ;;  %v1884_v18 = vld [vmem:[%s2653_s0 + $0x10] sm:$0xff] }
   0x7   :  { %1923 = vmatpush.bf16.msra.mxu2 %v1896_v4  ;;  %v538_v19 = vld [vmem:[%s2654_s5 + $0x48] sm:$0xff]  ;;  %v537_v20 = vld [vmem:[%s2654_s5 + $0x40] sm:$0xff]  ;;  %v540_v21 = vld [vmem:[%s2654_s5 + $0x58] sm:$0xff] }
   0x8   :  { %v539_v22 = vld [vmem:[%s2654_s5 + $0x50] sm:$0xff]  ;;  %v1885_v23 = vld [vmem:[%s2653_s0 + $0x18] sm:$0xff]  ;;  %v542_v24 = vld [vmem:[%s2654_s5 + $0x68] sm:$0xff] }
   0x9   :  { %v541_v25 = vld [vmem:[%s2654_s5 + $0x60] sm:$0xff]  ;;  %v544_v26 = vld [vmem:[%s2654_s5 + $0x78] sm:$0xff]  ;;  %v543_v27 = vld [vmem:[%s2654_s5 + $0x70] sm:$0xff] }
   0xa   :  { %200 = vmatpush.bf16.msra.mxu0 %v1895_v6  ;;  %v1886_v28 = vld [vmem:[%s2653_s0 + $0x20] sm:$0xff]  ;;  %v835_v29 = vld [vmem:[%s2655_s7 + $0x8] sm:$0xff]  ;;  %v1888_v30 = vld [vmem:[%s2653_s0 + $0x30] sm:$0xff] }
   0xb   :  { %557 = vperm.xlu1 %1943, %v531_v7   ;;  %1924 = vmatpush.bf16.msra.mxu2 %v1895_v6  ;;  %v834_v31 = vld [vmem:[%s2655_s7] sm:$0xff]  ;;  %v836_v32 = vld [vmem:[%s2655_s7 + $0x10] sm:$0xff]  ;;  %v1887_v34 = vld [vmem:[%s2653_s0 + $0x28] sm:$0xff] }
   0xc   :  { %567 = vperm.xlu2 %1944, %v533_v13   ;;  %v1371_v33 = vld [vmem:[%s2656_s6] sm:$0xff]  ;;  %v837_v35 = vld [vmem:[%s2655_s7 + $0x18] sm:$0xff]  ;;  %v1372_v37 = vld [vmem:[%s2656_s6 + $0x8] sm:$0xff] }
   0xd   :  { %v1889_v36 = vld [vmem:[%s2653_s0 + $0x38] sm:$0xff]  ;;  %v838_v38 = vld [vmem:[%s2655_s7 + $0x20] sm:$0xff]  ;;  %v1373_v39 = vld [vmem:[%s2656_s6 + $0x10] sm:$0xff] }
   0xe   :  { %201 = vmatpush.bf16.msra.mxu0 %v1894_v8  ;;  %v839_v40 = vld [vmem:[%s2655_s7 + $0x28] sm:$0xff]  ;;  %v1374_v41 = vld [vmem:[%s2656_s6 + $0x18] sm:$0xff]  ;;  %v840_v42 = vld [vmem:[%s2655_s7 + $0x30] sm:$0xff] }
   0xf   :  { %1925 = vmatpush.bf16.msra.mxu2 %v1894_v8  ;;  %v1375_v43 = vld [vmem:[%s2656_s6 + $0x20] sm:$0xff]  ;;  %v1905_v44 = vld [vmem:[%s2652_s2 + $0x38] sm:$0xff]  ;;  %v1904_v45 = vld [vmem:[%s2652_s2 + $0x30] sm:$0xff] }
  0x10   :  { %385 = vmatpush.bf16.msra.mxu1 %v1905_v44  ;;  %v841_v46 = vld [vmem:[%s2655_s7 + $0x38] sm:$0xff]  ;;  %v1376_v47 = vld [vmem:[%s2656_s6 + $0x28] sm:$0xff]  ;;  %v1902_v49 = vld [vmem:[%s2652_s2 + $0x20] sm:$0xff] }
  0x11   :  { %v1903_v48 = vld [vmem:[%s2652_s2 + $0x28] sm:$0xff]  ;;  %v1378_v50 = vld [vmem:[%s2656_s6 + $0x38] sm:$0xff]  ;;  %v1377_v52 = vld [vmem:[%s2656_s6 + $0x30] sm:$0xff] }
  0x12   :  { %202 = vmatpush.bf16.msra.mxu0 %v1893_v9  ;;  %322 = vxpose.xlu0.c.b16.cont [2/8] %v1883_v10, 128  ;;  %v1901_v51 = vld [vmem:[%s2652_s2 + $0x18] sm:$0xff]  ;;  %v1379_v53 = vld [vmem:[%s2656_s6 + $0x40] sm:$0xff]  ;;  %v1900_v54 = vld [vmem:[%s2652_s2 + $0x10] sm:$0xff] }
  0x13   :  { %572 = vperm.xlu1 %1943, %v534_v11   ;;  %1926 = vmatpush.bf16.msra.mxu2 %v1893_v9  ;;  %v1899_v55 = vld [vmem:[%s2652_s2 + $0x8] sm:$0xff]  ;;  %v2191_v57 = vld [vmem:[%s2657_s10 + $0x18] sm:$0xff]  ;;  %v1898_v59 = vld [vmem:[%s2652_s2] sm:$0xff] }
  0x14   :  { %577 = vperm.xlu2 %1944, %v535_v16   ;;  %386 = vmatpush.bf16.msra.mxu1 %v1904_v45  ;;  %v843_v56 = vld [vmem:[%s2655_s7 + $0x48] sm:$0xff]  ;;  %v2202_v60 = vld [vmem:[%s2657_s10 + $0x10] sm:$0xff]  ;;  %v2215_v62 = vld [vmem:[%s2657_s10] sm:$0xff] }
  0x15   :  { %v1380_v58 = vld [vmem:[%s2656_s6 + $0x48] sm:$0xff]  ;;  %1938 = vmatpush.msra.mxu3 %v2191_v57  ;;  %v844_v63 = vld [vmem:[%s2655_s7 + $0x50] sm:$0xff]  ;;  %v1382_v3 = vld [vmem:[%s2656_s6 + $0x58] sm:$0xff] }
  0x16   :  { %203 = vmatpush.bf16.msra.mxu0 %v1892_v12  ;;  %v2208_v61 = vld [vmem:[%s2657_s10 + $0x8] sm:$0xff]  ;;  %v1381_v0 = vld [vmem:[%s2656_s6 + $0x50] sm:$0xff]  ;;  %v846_v5 = vld [vmem:[%s2655_s7 + $0x60] sm:$0xff] }
  0x17   :  { %1927 = vmatpush.bf16.msra.mxu2 %v1892_v12  ;;  %1939 = vmatpush.msra.mxu3 %v2202_v60  ;;  %v1383_v6 = vld [vmem:[%s2656_s6 + $0x60] sm:$0xff]  ;;  %v847_v8 = vld [vmem:[%s2655_s7 + $0x68] sm:$0xff]  ;;  %v848_v9 = vld [vmem:[%s2655_s7 + $0x70] sm:$0xff] }
  0x18   :  { %387 = vmatpush.bf16.msra.mxu1 %v1903_v48  ;;  %v849_v16 = vld [vmem:[%s2655_s7 + $0x78] sm:$0xff] }
  0x19   :  { %1940 = vmatpush.msra.mxu3 %v2208_v61 }
  0x1a   :  { %204 = vmatpush.bf16.msra.mxu0 %v1891_v14 }
  0x1b   :  { %582 = vperm.xlu1 %1943, %v536_v15   ;;  %1928 = vmatpush.bf16.msra.mxu2 %v1891_v14  ;;  %v529_v15 = vld [vmem:[%s2654_s5] sm:$0xff] }
  0x1c   :  { %587 = vperm.xlu2 %1944, %v537_v20   ;;  %388 = vmatpush.bf16.msra.mxu1 %v1902_v49 }
  0x1d   :  { %1941 = vmatpush.msra.mxu3 %v2215_v62 }
  0x1e   :  { %205 = vmatpush.bf16.msra.mxu0 %v1890_v17 }
  0x1f   :  { %1929 = vmatpush.bf16.msra.mxu2 %v1890_v17 }
  0x20   :  { %389 = vmatpush.bf16.msra.mxu1 %v1901_v51 }
  0x21   :  { %206 = vmatmul.bf16.vlgmr.msra.gmra.mxu0 %v1882_v1  ;;  %v845_v1 = vld [vmem:[%s2655_s7 + $0x58] sm:$0xff] }
  0x22   :  { %323 = vxpose.xlu0.c.b16.cont [3/8] %v1884_v18, 128  ;;  %236 = vmatmul.bf16.vlgmr.msra.gmra.mxu2 %v1888_v30 }
  0x23   :  { %592 = vperm.xlu1 %1943, %v538_v19   ;;  %1930 = vmatpush.bf16.msrb.mxu2 %v1905_v44 }
  0x24   :  { %597 = vperm.xlu2 %1944, %v539_v22   ;;  %390 = vmatpush.bf16.msra.mxu1 %v1900_v54 }
  0x27   :  { %1931 = vmatpush.bf16.msrb.mxu2 %v1904_v45 }
  0x28   :  { %391 = vmatpush.bf16.msra.mxu1 %v1899_v55 }
  0x2b   :  { %602 = vperm.xlu1 %1943, %v540_v21   ;;  %1932 = vmatpush.bf16.msrb.mxu2 %v1903_v48  ;;  %v1386_v21 = vld [vmem:[%s2656_s6 + $0x78] sm:$0xff] }
  0x2c   :  { %607 = vperm.xlu2 %1944, %v541_v25   ;;  %392 = vmatpush.bf16.msra.mxu1 %v1898_v59 }
  0x2f   :  { %1933 = vmatpush.bf16.msrb.mxu2 %v1902_v49 }
  0x31   :  { %211 = vmatmul.bf16.gmra.mxu0 %v1883_v10 }
  0x32   :  { %324 = vxpose.xlu0.c.b16.cont [4/8] %v1885_v23, 128  ;;  %241 = vmatmul.bf16.gmra.mxu2 %v1889_v36 }
  0x33   :  { %612 = vperm.xlu1 %1943, %v542_v24   ;;  %1934 = vmatpush.bf16.msrb.mxu2 %v1901_v51 }
  0x34   :  { %617 = vperm.xlu2 %1944, %v543_v27   ;;  %v1384_v27 = vld [vmem:[%s2656_s6 + $0x68] sm:$0xff] }
  0x37   :  { %1935 = vmatpush.bf16.msrb.mxu2 %v1900_v54 }
  0x3b   :  { %622 = vperm.xlu1 %1943, %v544_v26   ;;  %1936 = vmatpush.bf16.msrb.mxu2 %v1899_v55 }
  0x3c   :  { %852 = vperm.xlu2 %1944, %v834_v31  }
  0x3f   :  { %1937 = vmatpush.bf16.msrb.mxu2 %v1898_v59 }
  0x41   :  { %216 = vmatmul.bf16.gmra.mxu0 %v1884_v18 }
  0x42   :  { %325 = vxpose.xlu0.c.b16.cont [5/8] %v1886_v28, 128 }
  0x43   :  { %857 = vperm.xlu1 %1943, %v835_v29  }
  0x44   :  { %1389 = vperm.xlu2 %1944, %v1371_v33  }
  0x4b   :  { %862 = vperm.xlu1 %1943, %v836_v32   ;;  %v1385_v32 = vld [vmem:[%s2656_s6 + $0x70] sm:$0xff] }
  0x4c   :  { %1394 = vperm.xlu2 %1944, %v1372_v37  }
  0x51   :  { %221 = vmatmul.bf16.gmra.mxu0 %v1885_v23 }
  0x52   :  { %326 = vxpose.xlu0.c.b16.cont [6/8] %v1887_v34, 128 }
  0x53   :  { %867 = vperm.xlu1 %1943, %v837_v35  }
  0x54   :  { %1399 = vperm.xlu2 %1944, %v1373_v39  }
  0x5b   :  { %872 = vperm.xlu1 %1943, %v838_v38  }
  0x5c   :  { %1404 = vperm.xlu2 %1944, %v1374_v41  }
  0x5e   :  { %v563_v22 = vpop.permute.xlu2 %562 }
  0x61   :  { %226 = vmatmul.bf16.gmra.mxu0 %v1886_v28 }
  0x62   :  { %327 = vxpose.xlu0.c.b16.cont [7/8] %v1888_v30, 128 }
  0x63   :  { %877 = vperm.xlu1 %1943, %v839_v40  }
  0x64   :  { %1409 = vperm.xlu2 %1944, %v1375_v43  }
  0x66   :  { %v568_v28 = vpop.permute.xlu2 %567 }
  0x6b   :  { %882 = vperm.xlu1 %1943, %v840_v42  }
  0x6c   :  { %1414 = vperm.xlu2 %1944, %v1376_v47  }
  0x6e   :  { %v578_v38 = vpop.permute.xlu2 %577 }
  0x71   :  { %231 = vmatmul.bf16.gmra.mxu0 %v1887_v34 }
  0x72   :  { %328 = vxpose.xlu0.c.b16.end [8/8] %v1889_v36, 128 }
  0x73   :  { %887 = vperm.xlu1 %1943, %v841_v46  }
  0x74   :  { %1419 = vperm.xlu2 %1944, %v1377_v52  }
  0x75   :  { %v553_v10 = vpop.permute.xlu1 %552 }
  0x76   :  { %v588_v49 = vpop.permute.xlu2 %587 }
  0x7b   :  { %1424 = vperm.xlu1 %1943, %v1378_v50  }
  0x7c   :  { %897 = vperm.xlu2 %1944, %v843_v56  }
  0x7d   :  { %v558_v17 = vpop.permute.xlu1 %557 }
  0x83   :  { %1429 = vperm.xlu1 %1943, %v1379_v53  }
  0x84   :  { %902 = vperm.xlu2 %1944, %v844_v63   ;;  %v1920_v63 = vld [vmem:[%s2658_s4 + $0x30] sm:$0xff] }
  0x85   :  { %v573_v33 = vpop.permute.xlu1 %572 }
  0x8b   :  { %1434 = vperm.xlu1 %1943, %v1380_v58   ;;  %v1921_v58 = vld [vmem:[%s2658_s4 + $0x38] sm:$0xff] }
  0x8c   :  { %907 = vperm.xlu2 %1944, %v845_v1   ;;  %785 = vmatpush.bf16.msra.mxu2 %v1921_v58  ;;  %v1919_v1 = vld [vmem:[%s2658_s4 + $0x28] sm:$0xff] }
  0x8d   :  { %v583_v43 = vpop.permute.xlu1 %582 }
  0x90   :  { %786 = vmatpush.bf16.msra.mxu2 %v1920_v63 }
  0x93   :  { %1439 = vperm.xlu1 %1943, %v1381_v0  }
  0x94   :  { %912 = vperm.xlu2 %1944, %v846_v5   ;;  %787 = vmatpush.bf16.msra.mxu2 %v1919_v1 }
  0x95   :  { %v593_v53 = vpop.permute.xlu1 %592 }
  0x9b   :  { %1444 = vperm.xlu1 %1943, %v1382_v3   ;;  %v598_v3 = vpop.permute.xlu2 %597 }
  0x9c   :  { %917 = vperm.xlu2 %1944, %v847_v8  }
  0x9d   :  { %v603_v8 = vpop.permute.xlu1 %602 }
  0x9e   :  { %v207_v4 = vpop.f32.mrf.mxu0 }
  0x9f   :  { %252 = vst.msk [vmem:[#allocation2] sm:$0xff] %vm251_vm0, %v207_v4 }
  0xa3   :  { %1449 = vperm.xlu1 %1943, %v1383_v6  }
  0xa4   :  { %547 = vperm.xlu2 %1944, %v529_v15   ;;  %v948_v15 = vld [vmem:[%s2659_s9 + $0x10] sm:$0xff] }
  0xa5   :  { %v237_v42 = vpop.f32.mrf.mxu2 }
  0xa6   :  { %v209_v7 = vpop.f32.mrf.mxu0  ;;  %264 = vst.msk [vmem:[#allocation2 + $0x60] sm:$0xff] %vm251_vm0, %v237_v42  ;;  %v642_v42 = vld [vmem:[%s2661_s3 + $0x8] sm:$0xff] }
  0xa7   :  { %253 = vst.msk [vmem:[#allocation2 + $0x8] sm:$0xff] %vm251_vm0, %v209_v7  ;;  %v1918_v7 = vld [vmem:[%s2658_s4 + $0x20] sm:$0xff] }
  0xa8   :  { %788 = vmatpush.bf16.msra.mxu2 %v1918_v7  ;;  %v1183_v7 = vld [vmem:[%s2663_s11 + $0x10] sm:$0xff] }
  0xab   :  { %922 = vperm.xlu1 %1943, %v848_v9  }
  0xac   :  { %1454 = vperm.xlu2 %1944, %v1384_v27  }
  0xad   :  { %v239_v48 = vpop.f32.mrf.mxu2 }
  0xae   :  { %v329_v11 = vpop.trf.xlu0  ;;  %v212_v12 = vpop.f32.mrf.mxu0  ;;  %v514_v13 = vld [vmem:[#allocation2 + $0x8] sm:$0xff]  ;;  %265 = vst.msk [vmem:[#allocation2 + $0x68] sm:$0xff] %vm251_vm0, %v239_v48  ;;  %v1184_v48 = vld [vmem:[%s2663_s11 + $0x18] sm:$0xff] }
  0xaf   :  { %254 = vst.msk [vmem:[#allocation2 + $0x10] sm:$0xff] %vm251_vm0, %v212_v12  ;;  %393 = vmatmul.bf16.vlgmr.msra.gmra.mxu1 %v329_v11  ;;  %v626_v14 = vmul.f32 %v553_v10, %v514_v13  ;;  %v1917_v11 = vld [vmem:[%s2658_s4 + $0x18] sm:$0xff]  ;;  %1245 = vmatpush.msrb.mxu0 %v1184_v48 }
  0xb0   :  { %789 = vmatpush.bf16.msra.mxu2 %v1917_v11  ;;  %v949_v13 = vld [vmem:[%s2659_s9 + $0x18] sm:$0xff] }
  0xb1   :  { %1819 = vmatmul.msk.f32.vlgmr.msra.gmra.mxu3 %vm251_vm0, %v626_v14  ;;  %v1916_v14 = vld [vmem:[%s2658_s4 + $0x10] sm:$0xff]  ;;  %1246 = vmatpush.msrb.mxu0 %v1183_v7  ;;  %v654_v7 = vld [vmem:[%s2661_s3 + $0x68] sm:$0xff] }
  0xb2   :  { %1128 = vmatpush.msrb.mxu3 %v949_v13 }
  0xb3   :  { %927 = vperm.xlu1 %1943, %v849_v16   ;;  %v608_v16 = vpop.permute.xlu2 %607 }
  0xb4   :  { %1459 = vperm.xlu2 %1944, %v1385_v32   ;;  %790 = vmatpush.bf16.msra.mxu2 %v1916_v14  ;;  %v1484_v32 = vld [vmem:[%s2660_s8 + $0x8] sm:$0xff]  ;;  %v647_v14 = vld [vmem:[%s2661_s3 + $0x30] sm:$0xff] }
  0xb5   :  { %v242_v52 = vpop.f32.mrf.mxu2  ;;  %1129 = vmatpush.msrb.mxu3 %v948_v15 }
  0xb6   :  { %v214_v18 = vpop.f32.mrf.mxu0  ;;  %v515_v19 = vld [vmem:[#allocation2 + $0x10] sm:$0xff]  ;;  %266 = vst.msk [vmem:[#allocation2 + $0x70] sm:$0xff] %vm251_vm0, %v242_v52 }
  0xb7   :  { %255 = vst.msk [vmem:[#allocation2 + $0x18] sm:$0xff] %vm251_vm0, %v214_v18  ;;  %v627_v20 = vmul.f32 %v558_v17, %v515_v19  ;;  %v525_v17 = vld [vmem:[#allocation2 + $0x60] sm:$0xff]  ;;  %v947_v18 = vld [vmem:[%s2659_s9 + $0x8] sm:$0xff] }
  0xb8   :  { %v1915_v19 = vld [vmem:[%s2658_s4 + $0x8] sm:$0xff]  ;;  %1130 = vmatpush.msrb.mxu3 %v947_v18 }
  0xb9   :  { %1820 = vmatmul.msk.f32.gmra.mxu3 %vm251_vm0, %v627_v20  ;;  %v637_v20 = vmul.f32 %v608_v16, %v525_v17  ;;  %791 = vmatpush.bf16.msra.mxu2 %v1915_v19  ;;  %v1909_v16 = vld [vmem:[%s2662_s1 + $0x18] sm:$0xff] }
  0xbb   :  { %1464 = vperm.xlu1 %1943, %v1386_v21   ;;  %v946_v21 = vld [vmem:[%s2659_s9] sm:$0xff] }
  0xbc   :  { %1131 = vmatpush.msrb.mxu3 %v946_v21  ;;  %v648_v21 = vld [vmem:[%s2661_s3 + $0x38] sm:$0xff] }
  0xbd   :  { %v244_v0 = vpop.f32.mrf.mxu2 }
  0xbe   :  { %v330_v23 = vpop.trf.xlu0  ;;  %v217_v24 = vpop.f32.mrf.mxu0  ;;  %v516_v25 = vld [vmem:[#allocation2 + $0x18] sm:$0xff]  ;;  %267 = vst.msk [vmem:[#allocation2 + $0x78] sm:$0xff] %vm251_vm0, %v244_v0  ;;  %v645_v0 = vld [vmem:[%s2661_s3 + $0x20] sm:$0xff] }
  0xbf   :  { %256 = vst.msk [vmem:[#allocation2 + $0x20] sm:$0xff] %vm251_vm0, %v217_v24  ;;  %398 = vmatmul.bf16.gmra.mxu1 %v330_v23  ;;  %v628_v26 = vmul.f32 %v563_v22, %v516_v25  ;;  %v613_v22 = vpop.permute.xlu1 %612  ;;  %v1914_v23 = vld [vmem:[%s2658_s4] sm:$0xff]  ;;  %v526_v24 = vld [vmem:[#allocation2 + $0x68] sm:$0xff]  ;;  %v618_v25 = vpop.permute.xlu2 %617 }
  0xc0   :  { %792 = vmatpush.bf16.msra.mxu2 %v1914_v23 }
  0xc1   :  { %1821 = vmatmul.msk.f32.gmra.mxu3 %vm251_vm0, %v628_v26  ;;  %v638_v26 = vmul.f32 %v613_v22, %v526_v24  ;;  %v842_v22 = vld [vmem:[%s2655_s7 + $0x40] sm:$0xff] }
  0xc6   :  { %v219_v29 = vpop.f32.mrf.mxu0  ;;  %v517_v30 = vld [vmem:[#allocation2 + $0x20] sm:$0xff] }
  0xc7   :  { %257 = vst.msk [vmem:[#allocation2 + $0x28] sm:$0xff] %vm251_vm0, %v219_v29  ;;  %v629_v31 = vmul.f32 %v568_v28, %v517_v30  ;;  %v1486_v28 = vld [vmem:[%s2660_s8 + $0x18] sm:$0xff]  ;;  %v1485_v29 = vld [vmem:[%s2660_s8 + $0x10] sm:$0xff]  ;;  %v623_v30 = vpop.permute.xlu1 %622 }
  0xc8   :  { %1548 = vmatpush.msrb.mxu1 %v1486_v28  ;;  %v1182_v28 = vld [vmem:[%s2663_s11 + $0x8] sm:$0xff] }
  0xc9   :  { %1822 = vmatmul.msk.f32.gmra.mxu3 %vm251_vm0, %v629_v31  ;;  %v527_v31 = vld [vmem:[#allocation2 + $0x70] sm:$0xff]  ;;  %1247 = vmatpush.msrb.mxu0 %v1182_v28  ;;  %v513_v28 = vld [vmem:[#allocation2] sm:$0xff] }
  0xca   :  { %1549 = vmatpush.msrb.mxu1 %v1485_v29 }
  0xcc   :  { %1550 = vmatpush.msrb.mxu1 %v1484_v32 }
  0xce   :  { %v331_v34 = vpop.trf.xlu0  ;;  %v222_v35 = vpop.f32.mrf.mxu0  ;;  %v518_v36 = vld [vmem:[#allocation2 + $0x28] sm:$0xff] }
  0xcf   :  { %258 = vst.msk [vmem:[#allocation2 + $0x30] sm:$0xff] %vm251_vm0, %v222_v35  ;;  %403 = vmatmul.bf16.gmra.mxu1 %v331_v34  ;;  %v630_v37 = vmul.f32 %v573_v33, %v518_v36  ;;  %v639_v33 = vmul.f32 %v618_v25, %v527_v31  ;;  %v2338_v34 = vpop.permute.xlu2 %852  ;;  %v2342_v35 = vpop.permute.xlu1 %857  ;;  %v1910_v31 = vld [vmem:[%s2662_s1 + $0x20] sm:$0xff] }
  0xd1   :  { %1823 = vmatmul.msk.f32.gmra.mxu3 %vm251_vm0, %v630_v37 }
  0xd6   :  { %v224_v39 = vpop.f32.mrf.mxu0  ;;  %v519_v40 = vld [vmem:[#allocation2 + $0x30] sm:$0xff] }
  0xd7   :  { %259 = vst.msk [vmem:[#allocation2 + $0x38] sm:$0xff] %vm251_vm0, %v224_v39  ;;  %v631_v41 = vmul.f32 %v578_v38, %v519_v40  ;;  %v1390_v38 = vpop.permute.xlu2 %1389  ;;  %v641_v39 = vld [vmem:[%s2661_s3] sm:$0xff] }
  0xd8   :  { %v1906_v40 = vld [vmem:[%s2662_s1] sm:$0xff] }
  0xd9   :  { %1824 = vmatmul.msk.f32.gmra.mxu3 %vm251_vm0, %v631_v41  ;;  %1945 = vset.pattern.permute.xlu0 %v1947_v2 }
  0xde   :  { %v332_v44 = vpop.trf.xlu0  ;;  %v227_v45 = vpop.f32.mrf.mxu0  ;;  %v520_v46 = vld [vmem:[#allocation2 + $0x38] sm:$0xff] }
  0xdf   :  { %260 = vst.msk [vmem:[#allocation2 + $0x40] sm:$0xff] %vm251_vm0, %v227_v45  ;;  %408 = vmatmul.bf16.gmra.mxu1 %v332_v44  ;;  %v632_v47 = vmul.f32 %v583_v43, %v520_v46 }
  0xe0   :  { %892 = vperm.xlu0 %1945, %v842_v22  }
  0xe1   :  { %1825 = vmatmul.msk.f32.gmra.mxu3 %vm251_vm0, %v632_v47 }
  0xe6   :  { %v229_v50 = vpop.f32.mrf.mxu0  ;;  %v521_v51 = vld [vmem:[#allocation2 + $0x40] sm:$0xff] }
  0xe7   :  { %261 = vst.msk [vmem:[#allocation2 + $0x48] sm:$0xff] %vm251_vm0, %v229_v50  ;;  %v633_v2 = vmul.f32 %v588_v49, %v521_v51  ;;  %v643_v49 = vld [vmem:[%s2661_s3 + $0x10] sm:$0xff]  ;;  %v1907_v51 = vld [vmem:[%s2662_s1 + $0x8] sm:$0xff] }
  0xe9   :  { %1826 = vmatmul.msk.f32.gmra.mxu3 %vm251_vm0, %v633_v2 }
  0xee   :  { %v333_v54 = vpop.trf.xlu0  ;;  %v232_v55 = vpop.f32.mrf.mxu0  ;;  %v522_v56 = vld [vmem:[#allocation2 + $0x48] sm:$0xff] }
  0xef   :  { %262 = vst.msk [vmem:[#allocation2 + $0x50] sm:$0xff] %vm251_vm0, %v232_v55  ;;  %413 = vmatmul.bf16.gmra.mxu1 %v333_v54  ;;  %v634_v59 = vmul.f32 %v593_v53, %v522_v56  ;;  %v644_v55 = vld [vmem:[%s2661_s3 + $0x18] sm:$0xff] }
  0xf1   :  { %1827 = vmatmul.msk.f32.gmra.mxu3 %vm251_vm0, %v634_v59 }
  0xf6   :  { %v234_v4 = vpop.f32.mrf.mxu0  ;;  %v523_v5 = vld [vmem:[#allocation2 + $0x50] sm:$0xff] }
  0xf7   :  { %263 = vst.msk [vmem:[#allocation2 + $0x58] sm:$0xff] %vm251_vm0, %v234_v4  ;;  %v635_v6 = vmul.f32 %v598_v3, %v523_v5  ;;  %v1908_v3 = vld [vmem:[%s2662_s1 + $0x10] sm:$0xff] }
  0xf9   :  { %1828 = vmatmul.msk.f32.gmra.mxu3 %vm251_vm0, %v635_v6 }
  0xfe   :  { %v334_v9 = vpop.trf.xlu0  ;;  %v524_v10 = vld [vmem:[#allocation2 + $0x58] sm:$0xff] }
  0xff   :  { %418 = vmatmul.bf16.gmra.mxu1 %v334_v9  ;;  %v636_v12 = vmul.f32 %v603_v8, %v524_v10  ;;  %v646_v9 = vld [vmem:[%s2661_s3 + $0x28] sm:$0xff] }
 0x101   :  { %1829 = vmatmul.msk.f32.gmra.mxu3 %vm251_vm0, %v636_v12 }
 0x109   :  { %1830 = vmatmul.msk.f32.gmra.mxu3 %vm251_vm0, %v637_v20 }
 0x10e   :  { %v335_v27 = vpop.trf.xlu0 }
 0x10f   :  { %423 = vmatmul.bf16.vlgmr.msrb.gmra.mxu2 %v335_v27 }
 0x110   :  { %1015 = vmatpush.msrb.mxu2 %v2191_v57  ;;  %v1483_v57 = vld [vmem:[%s2660_s8] sm:$0xff] }
 0x111   :  { %1831 = vmatmul.msk.f32.gmra.mxu3 %vm251_vm0, %v638_v26  ;;  %1551 = vmatpush.msrb.mxu1 %v1483_v57 }
 0x112   :  { %1016 = vmatpush.msrb.mxu2 %v2202_v60  ;;  %v528_v60 = vld [vmem:[#allocation2 + $0x78] sm:$0xff] }
 0x113   :  { %v640_v36 = vmul.f32 %v623_v30, %v528_v60  ;;  %v649_v30 = vld [vmem:[%s2661_s3 + $0x40] sm:$0xff] }
 0x114   :  { %1017 = vmatpush.msrb.mxu2 %v2208_v61  ;;  %v2345_v61 = vpop.permute.xlu1 %862 }
 0x116   :  { %1018 = vmatpush.msrb.mxu2 %v2215_v62  ;;  %v1395_v62 = vpop.permute.xlu2 %1394 }
 0x119   :  { %1832 = vmatmul.msk.f32.gmra.mxu3 %vm251_vm0, %v639_v33 }
 0x11c   :  { %v2358_v43 = vpop.permute.xlu1 %867 }
 0x11e   :  { %v336_v37 = vpop.trf.xlu0  ;;  %v1400_v44 = vpop.permute.xlu2 %1399 }
 0x11f   :  { %428 = vmatmul.bf16.gmra.mxu2 %v336_v37 }
 0x121   :  { %1833 = vmatmul.msk.f32.gmra.mxu3 %vm251_vm0, %v640_v36  ;;  %v650_v36 = vld [vmem:[%s2661_s3 + $0x48] sm:$0xff] }
 0x124   :  { %v2370_v50 = vpop.permute.xlu1 %872 }
 0x126   :  { %v1405_v54 = vpop.permute.xlu2 %1404 }
 0x129   :  { %1834 = vmatmul.msk.f32.vlgmr.msrb.gmra.mxu3 %vm251_vm0, %v641_v39 }
 0x12c   :  { %v394_v41 = vpop.f32.mrf.mxu1  ;;  %v2381_v56 = vpop.permute.xlu1 %877 }
 0x12d   :  { %440 = vst.msk [vmem:[#allocation3] sm:$0xff] %vm251_vm0, %v394_v41 }
 0x12e   :  { %v1410_v1 = vpop.permute.xlu2 %1409 }
 0x12f   :  { %793 = vmatmul.bf16.vlgmr.msra.gmra.mxu2 %v1906_v40 }
 0x131   :  { %1835 = vmatmul.msk.f32.gmra.mxu3 %vm251_vm0, %v642_v42  ;;  %v651_v42 = vld [vmem:[%s2661_s3 + $0x50] sm:$0xff] }
 0x134   :  { %v396_v45 = vpop.f32.mrf.mxu1  ;;  %v1355_v46 = vld [vmem:[#allocation3] sm:$0xff]  ;;  %v2396_v8 = vpop.permute.xlu1 %882 }
 0x135   :  { %441 = vst.msk [vmem:[#allocation3 + $0x8] sm:$0xff] %vm251_vm0, %v396_v45  ;;  %v1467_v47 = vmul.f32 %v1390_v38, %v1355_v46  ;;  %v2423_v26 = vpop.f32.mrf.mxu3  ;;  %v1911_v46 = vld [vmem:[%s2662_s1 + $0x28] sm:$0xff] }
 0x136   :  { %v1415_v10 = vpop.permute.xlu2 %1414 }
 0x137   :  { %1866 = vmatmul.msk.f32.vlgmr.msrb.gmra.mxu1 %vm251_vm0, %v1467_v47 }
 0x139   :  { %1836 = vmatmul.msk.f32.gmra.mxu3 %vm251_vm0, %v643_v49  ;;  %v1181_v49 = vld [vmem:[%s2663_s11] sm:$0xff] }
 0x13a   :  { %1248 = vmatpush.msrb.mxu0 %v1181_v49 }
 0x13c   :  { %v399_v2 = vpop.f32.mrf.mxu1  ;;  %v1356_v52 = vld [vmem:[#allocation3 + $0x8] sm:$0xff]  ;;  %v2408_v15 = vpop.permute.xlu1 %887 }
 0x13d   :  { %442 = vst.msk [vmem:[#allocation3 + $0x10] sm:$0xff] %vm251_vm0, %v399_v2  ;;  %v1468_v53 = vmul.f32 %v1395_v62, %v1356_v52  ;;  %v2443_v37 = vpop.f32.mrf.mxu3  ;;  %v652_v2 = vld [vmem:[%s2661_s3 + $0x58] sm:$0xff] }
 0x13e   :  { %v1420_v17 = vpop.permute.xlu2 %1419 }
 0x13f   :  { %798 = vmatmul.bf16.gmra.mxu2 %v1907_v51  ;;  %1867 = vmatmul.msk.f32.gmra.mxu1 %vm251_vm0, %v1468_v53 }
 0x141   :  { %1837 = vmatmul.msk.f32.gmra.mxu3 %vm251_vm0, %v644_v55 }
 0x144   :  { %v401_v58 = vpop.f32.mrf.mxu1  ;;  %v1357_v59 = vld [vmem:[#allocation3 + $0x10] sm:$0xff]  ;;  %v1425_v23 = vpop.permute.xlu1 %1424 }
 0x145   :  { %443 = vst.msk [vmem:[#allocation3 + $0x18] sm:$0xff] %vm251_vm0, %v401_v58  ;;  %v1469_v63 = vmul.f32 %v1400_v44, %v1357_v59  ;;  %v2454_v44 = vpop.f32.mrf.mxu3 }
 0x146   :  { %v2429_v29 = vpop.permute.xlu2 %897 }
 0x147   :  { %1868 = vmatmul.msk.f32.gmra.mxu1 %vm251_vm0, %v1469_v63  ;;  %v653_v63 = vld [vmem:[%s2661_s3 + $0x60] sm:$0xff] }
 0x149   :  { %1838 = vmatmul.msk.f32.gmra.mxu3 %vm251_vm0, %v645_v0 }
 0x14c   :  { %v404_v4 = vpop.f32.mrf.mxu1  ;;  %v1358_v5 = vld [vmem:[#allocation3 + $0x18] sm:$0xff]  ;;  %v1430_v32 = vpop.permute.xlu1 %1429 }
 0x14d   :  { %444 = vst.msk [vmem:[#allocation3 + $0x20] sm:$0xff] %vm251_vm0, %v404_v4  ;;  %v1470_v6 = vmul.f32 %v1405_v54, %v1358_v5  ;;  %v2471_v53 = vpop.f32.mrf.mxu3 }
 0x14e   :  { %v2446_v38 = vpop.permute.xlu2 %902 }
 0x14f   :  { %803 = vmatmul.bf16.gmra.mxu2 %v1908_v3  ;;  %1869 = vmatmul.msk.f32.gmra.mxu1 %vm251_vm0, %v1470_v6 }
 0x151   :  { %1839 = vmatmul.msk.f32.gmra.mxu3 %vm251_vm0, %v646_v9 }
 0x154   :  { %v406_v11 = vpop.f32.mrf.mxu1  ;;  %v1359_v12 = vld [vmem:[#allocation3 + $0x20] sm:$0xff]  ;;  %v1435_v41 = vpop.permute.xlu1 %1434 }
 0x155   :  { %445 = vst.msk [vmem:[#allocation3 + $0x28] sm:$0xff] %vm251_vm0, %v406_v11  ;;  %v1471_v13 = vmul.f32 %v1410_v1, %v1359_v12  ;;  %v1912_v1 = vld [vmem:[%s2662_s1 + $0x30] sm:$0xff]  ;;  %v2484_v4 = vpop.f32.mrf.mxu3 }
 0x156   :  { %v2457_v45 = vpop.permute.xlu2 %907  ;;  %v655_v11 = vld [vmem:[%s2661_s3 + $0x70] sm:$0xff] }
 0x157   :  { %1870 = vmatmul.msk.f32.gmra.mxu1 %vm251_vm0, %v1471_v13 }
 0x159   :  { %1840 = vmatmul.msk.f32.gmra.mxu3 %vm251_vm0, %v647_v14 }
 0x15c   :  { %v409_v18 = vpop.f32.mrf.mxu1  ;;  %v1360_v19 = vld [vmem:[#allocation3 + $0x28] sm:$0xff]  ;;  %v1440_v52 = vpop.permute.xlu1 %1439 }
 0x15d   :  { %446 = vst.msk [vmem:[#allocation3 + $0x30] sm:$0xff] %vm251_vm0, %v409_v18  ;;  %v1472_v20 = vmul.f32 %v1415_v10, %v1360_v19  ;;  %v2497_v12 = vpop.f32.mrf.mxu3  ;;  %v1913_v18 = vld [vmem:[%s2662_s1 + $0x38] sm:$0xff] }
 0x15e   :  { %v2473_v54 = vpop.permute.xlu2 %912 }
 0x15f   :  { %808 = vmatmul.bf16.gmra.mxu2 %v1909_v16  ;;  %1871 = vmatmul.msk.f32.gmra.mxu1 %vm251_vm0, %v1472_v20  ;;  %v656_v20 = vld [vmem:[%s2661_s3 + $0x78] sm:$0xff] }
 0x161   :  { %1841 = vmatmul.msk.f32.gmra.mxu3 %vm251_vm0, %v648_v21 }
 0x164   :  { %v411_v24 = vpop.f32.mrf.mxu1  ;;  %v1361_v25 = vld [vmem:[#allocation3 + $0x30] sm:$0xff]  ;;  %v1445_v0 = vpop.permute.xlu1 %1444 }
 0x165   :  { %447 = vst.msk [vmem:[#allocation3 + $0x38] sm:$0xff] %vm251_vm0, %v411_v24  ;;  %v1473_v27 = vmul.f32 %v1420_v17, %v1361_v25  ;;  %v2510_v22 = vpop.f32.mrf.mxu3 }
 0x166   :  { %v2486_v6 = vpop.permute.xlu2 %917 }
 0x167   :  { %1872 = vmatmul.msk.f32.gmra.mxu1 %vm251_vm0, %v1473_v27 }
 0x169   :  { %1842 = vmatmul.msk.f32.gmra.mxu3 %vm251_vm0, %v649_v30 }
 0x16c   :  { %v414_v33 = vpop.f32.mrf.mxu1  ;;  %v1362_v57 = vld [vmem:[#allocation3 + $0x38] sm:$0xff]  ;;  %v1450_v10 = vpop.permute.xlu1 %1449 }
 0x16d   :  { %448 = vst.msk [vmem:[#allocation3 + $0x40] sm:$0xff] %vm251_vm0, %v414_v33  ;;  %v1474_v60 = vmul.f32 %v1425_v23, %v1362_v57 }
 0x16e   :  { %v548_v13 = vpop.permute.xlu2 %547 }
 0x16f   :  { %813 = vmatmul.bf16.gmra.mxu2 %v1910_v31  ;;  %1873 = vmatmul.msk.f32.gmra.mxu1 %vm251_vm0, %v1474_v60  ;;  %v625_v57 = vmul.f32 %v548_v13, %v513_v28 }
 0x171   :  { %1843 = vmatmul.msk.f32.gmra.mxu3 %vm251_vm0, %v650_v36 }
 0x174   :  { %v416_v39 = vpop.f32.mrf.mxu1  ;;  %v1363_v62 = vld [vmem:[#allocation3 + $0x40] sm:$0xff]  ;;  %v2505_v19 = vpop.permute.xlu1 %922 }
 0x175   :  { %449 = vst.msk [vmem:[#allocation3 + $0x48] sm:$0xff] %vm251_vm0, %v416_v39  ;;  %v1475_v40 = vmul.f32 %v1430_v32, %v1363_v62 }
 0x176   :  { %v1455_v21 = vpop.permute.xlu2 %1454 }
 0x177   :  { %1874 = vmatmul.msk.f32.gmra.mxu1 %vm251_vm0, %v1475_v40 }
 0x179   :  { %1844 = vmatmul.msk.f32.gmra.mxu3 %vm251_vm0, %v651_v42 }
 0x17c   :  { %v419_v47 = vpop.f32.mrf.mxu1  ;;  %v1364_v48 = vld [vmem:[#allocation3 + $0x48] sm:$0xff]  ;;  %v2515_v27 = vpop.permute.xlu1 %927 }
 0x17d   :  { %450 = vst.msk [vmem:[#allocation3 + $0x50] sm:$0xff] %vm251_vm0, %v419_v47  ;;  %v1476_v51 = vmul.f32 %v1435_v41, %v1364_v48 }
 0x17e   :  { %v1460_v30 = vpop.permute.xlu2 %1459 }
 0x17f   :  { %818 = vmatmul.bf16.gmra.mxu2 %v1911_v46  ;;  %1875 = vmatmul.msk.f32.gmra.mxu1 %vm251_vm0, %v1476_v51  ;;  %v2525_v46 = vpop.f32.mrf.mxu3 }
 0x181   :  { %1845 = vmatmul.msk.f32.gmra.mxu3 %vm251_vm0, %v652_v2 }
 0x184   :  { %v421_v55 = vpop.f32.mrf.mxu1  ;;  %v1365_v58 = vld [vmem:[#allocation3 + $0x50] sm:$0xff]  ;;  %v1465_v60 = vpop.permute.xlu1 %1464 }
 0x185   :  { %451 = vst.msk [vmem:[#allocation3 + $0x58] sm:$0xff] %vm251_vm0, %v421_v55  ;;  %v1477_v59 = vmul.f32 %v1440_v52, %v1365_v58 }
 0x187   :  { %1876 = vmatmul.msk.f32.gmra.mxu1 %vm251_vm0, %v1477_v59  ;;  %v2529_v49 = vpop.f32.mrf.mxu3 }
 0x189   :  { %1846 = vmatmul.msk.f32.gmra.mxu3 %vm251_vm0, %v653_v63 }
 0x18c   :  { %v1366_v3 = vld [vmem:[#allocation3 + $0x58] sm:$0xff] }
 0x18d   :  { %v1478_v5 = vmul.f32 %v1445_v0, %v1366_v3 }
 0x18f   :  { %823 = vmatmul.bf16.gmra.mxu2 %v1912_v1  ;;  %1877 = vmatmul.msk.f32.gmra.mxu1 %vm251_vm0, %v1478_v5  ;;  %v2533_v52 = vpop.f32.mrf.mxu3 }
 0x191   :  { %1847 = vmatmul.msk.f32.gmra.mxu3 %vm251_vm0, %v654_v7 }
 0x192   :  { %v424_v9 = vpop.f32.mrf.mxu2 }
 0x193   :  { %452 = vst.msk [vmem:[#allocation3 + $0x60] sm:$0xff] %vm251_vm0, %v424_v9 }
 0x199   :  { %1848 = vmatmul.msk.f32.gmra.mxu3 %vm251_vm0, %v655_v11 }
 0x19a   :  { %v426_v14 = vpop.f32.mrf.mxu2  ;;  %v1367_v16 = vld [vmem:[#allocation3 + $0x60] sm:$0xff] }
 0x19b   :  { %453 = vst.msk [vmem:[#allocation3 + $0x68] sm:$0xff] %vm251_vm0, %v426_v14  ;;  %v1479_v17 = vmul.f32 %v1450_v10, %v1367_v16 }
 0x19d   :  { %1878 = vmatmul.msk.f32.gmra.mxu1 %vm251_vm0, %v1479_v17 }
 0x19f   :  { %828 = vmatmul.bf16.gmra.mxu2 %v1913_v18 }
 0x1a1   :  { %1849 = vmatmul.msk.f32.gmra.mxu3 %vm251_vm0, %v656_v20 }
 0x1a2   :  { %v429_v23 = vpop.f32.mrf.mxu2  ;;  %v1368_v24 = vld [vmem:[#allocation3 + $0x68] sm:$0xff] }
 0x1a3   :  { %454 = vst.msk [vmem:[#allocation3 + $0x70] sm:$0xff] %vm251_vm0, %v429_v23  ;;  %v1480_v25 = vmul.f32 %v1455_v21, %v1368_v24 }
 0x1a5   :  { %1879 = vmatmul.msk.f32.gmra.mxu1 %vm251_vm0, %v1480_v25 }
 0x1aa   :  { %v431_v31 = vpop.f32.mrf.mxu2  ;;  %v1369_v32 = vld [vmem:[#allocation3 + $0x70] sm:$0xff] }
 0x1ab   :  { %455 = vst.msk [vmem:[#allocation3 + $0x78] sm:$0xff] %vm251_vm0, %v431_v31  ;;  %v1481_v33 = vmul.f32 %v1460_v30, %v1369_v32 }
 0x1ad   :  { %1880 = vmatmul.msk.f32.gmra.mxu1 %vm251_vm0, %v1481_v33 }
 0x1af   :  { %1818 = vmatmul.msk.f32.vlgmr.msrb.gmra.mxu2 %vm251_vm0, %v625_v57 }
 0x1b2   :  { %v794_v36 = vpop.f32.mrf.mxu2  ;;  %v1370_v39 = vld [vmem:[#allocation3 + $0x78] sm:$0xff] }
 0x1b3   :  { %v930_v62 = vmul.f32 %v2338_v34, %v794_v36  ;;  %v1482_v40 = vmul.f32 %v1465_v60, %v1370_v39 }
 0x1b4   :  { %v1553_v20 = vpop.f32.mrf.mxu1 }
 0x1b5   :  { %1850 = vmatmul.msk.f32.vlgmr.msrb.gmra.mxu0 %vm251_vm0, %v930_v62  ;;  %1881 = vmatmul.msk.f32.gmra.mxu1 %vm251_vm0, %v1482_v40 }
 0x1ba   :  { %v796_v41 = vpop.f32.mrf.mxu2 }
 0x1bb   :  { %v931_v42 = vmul.f32 %v2342_v35, %v796_v41 }
 0x1bd   :  { %1851 = vmatmul.msk.f32.gmra.mxu0 %vm251_vm0, %v931_v42 }
 0x1c2   :  { %v799_v47 = vpop.f32.mrf.mxu2 }
 0x1c3   :  { %v932_v48 = vmul.f32 %v2345_v61, %v799_v47  ;;  %v2538_v61 = vpop.f32.mrf.mxu3 }
 0x1c5   :  { %1852 = vmatmul.msk.f32.gmra.mxu0 %vm251_vm0, %v932_v48 }
 0x1ca   :  { %v801_v34 = vpop.f32.mrf.mxu2 }
 0x1cb   :  { %v933_v51 = vmul.f32 %v2358_v43, %v801_v34  ;;  %v2543_v43 = vpop.f32.mrf.mxu3 }
 0x1cd   :  { %1853 = vmatmul.msk.f32.gmra.mxu0 %vm251_vm0, %v933_v51 }
 0x1d2   :  { %v804_v2 = vpop.f32.mrf.mxu2 }
 0x1d3   :  { %v934_v35 = vmul.f32 %v2370_v50, %v804_v2  ;;  %v893_v50 = vpop.permute.xlu0 %892  ;;  %v2547_v3 = vpop.f32.mrf.mxu3 }
 0x1d5   :  { %1854 = vmatmul.msk.f32.gmra.mxu0 %vm251_vm0, %v934_v35 }
 0x1da   :  { %v806_v55 = vpop.f32.mrf.mxu2 }
 0x1db   :  { %v935_v58 = vmul.f32 %v2381_v56, %v806_v55  ;;  %v2550_v9 = vpop.f32.mrf.mxu3 }
 0x1dd   :  { %1855 = vmatmul.msk.f32.gmra.mxu0 %vm251_vm0, %v935_v58 }
 0x1e2   :  { %v809_v59 = vpop.f32.mrf.mxu2 }
 0x1e3   :  { %v936_v63 = vmul.f32 %v2396_v8, %v809_v59 }
 0x1e5   :  { %1856 = vmatmul.msk.f32.gmra.mxu0 %vm251_vm0, %v936_v63 }
 0x1ea   :  { %v811_v0 = vpop.f32.mrf.mxu2 }
 0x1eb   :  { %v937_v1 = vmul.f32 %v2408_v15, %v811_v0  ;;  %v2555_v15 = vpop.f32.mrf.mxu3 }
 0x1ed   :  { %1857 = vmatmul.msk.f32.gmra.mxu0 %vm251_vm0, %v937_v1 }
 0x1f2   :  { %v814_v56 = vpop.f32.mrf.mxu2 }
 0x1f3   :  { %v938_v5 = vmul.f32 %v893_v50, %v814_v56  ;;  %v1133_v16 = vpop.f32.mrf.mxu3 }
 0x1f5   :  { %1858 = vmatmul.msk.f32.gmra.mxu0 %vm251_vm0, %v938_v5 }
 0x1fa   :  { %v816_v7 = vpop.f32.mrf.mxu2 }
 0x1fb   :  { %v939_v8 = vmul.f32 %v2429_v29, %v816_v7  ;;  %v1136_v29 = vpop.f32.mrf.mxu3 }
 0x1fc   :  { %v1137_v62 = vadd.f32 %v1136_v29, %v2423_v26 }
 0x1fd   :  { %1859 = vmatmul.msk.f32.gmra.mxu0 %vm251_vm0, %v939_v8 }
 0x202   :  { %v819_v10 = vpop.f32.mrf.mxu2 }
 0x203   :  { %v940_v11 = vmul.f32 %v2446_v38, %v819_v10  ;;  %v1139_v24 = vpop.f32.mrf.mxu3 }
 0x204   :  { %v1140_v48 = vadd.f32 %v1139_v24, %v2443_v37 }
 0x205   :  { %1860 = vmatmul.msk.f32.gmra.mxu0 %vm251_vm0, %v940_v11 }
 0x20a   :  { %v821_v13 = vpop.f32.mrf.mxu2 }
 0x20b   :  { %v941_v14 = vmul.f32 %v2457_v45, %v821_v13  ;;  %v1556_v45 = vpop.f32.mrf.mxu1 }
 0x20d   :  { %1861 = vmatmul.msk.f32.gmra.mxu0 %vm251_vm0, %v941_v14 }
 0x212   :  { %v824_v17 = vpop.f32.mrf.mxu2 }
 0x213   :  { %v942_v18 = vmul.f32 %v2473_v54, %v824_v17  ;;  %v1142_v54 = vpop.f32.mrf.mxu3  ;;  %v1559_v31 = vpop.f32.mrf.mxu1 }
 0x214   :  { %v1143_v58 = vadd.f32 %v1142_v54, %v2454_v44 }
 0x215   :  { %1862 = vmatmul.msk.f32.gmra.mxu0 %vm251_vm0, %v942_v18 }
 0x21a   :  { %v826_v21 = vpop.f32.mrf.mxu2 }
 0x21b   :  { %v943_v38 = vmul.f32 %v2486_v6, %v826_v21  ;;  %v2571_v6 = vld [vmem:[%s2664_s12] ss:$0 sm:$0xff]  ;;  %v1562_v39 = vpop.f32.mrf.mxu1 }
 0x21d   :  { %1863 = vmatmul.msk.f32.gmra.mxu0 %vm251_vm0, %v943_v38 }
 0x222   :  { %v829_v23 = vpop.f32.mrf.mxu2 }
 0x223   :  { %v944_v25 = vmul.f32 %v2505_v19, %v829_v23  ;;  %v1145_v19 = vpop.f32.mrf.mxu3  ;;  %v1565_v51 = vpop.f32.mrf.mxu1 }
 0x224   :  { %v1146_v56 = vadd.f32 %v1145_v19, %v2471_v53 }
 0x225   :  { %1864 = vmatmul.msk.f32.gmra.mxu0 %vm251_vm0, %v944_v25 }
 0x22a   :  { %v831_v28 = vpop.f32.mrf.mxu2 }
 0x22b   :  { %v945_v30 = vmul.f32 %v2515_v27, %v831_v28  ;;  %v1148_v34 = vpop.f32.mrf.mxu3  ;;  %v1568_v0 = vpop.f32.mrf.mxu1 }
 0x22c   :  { %v1149_v13 = vadd.f32 %v1148_v34, %v2484_v4 }
 0x22d   :  { %1865 = vmatmul.msk.f32.gmra.mxu0 %vm251_vm0, %v945_v30 }
 0x232   :  { %v1020_v32 = vpop.f32.mrf.mxu2  ;;  %v1250_v33 = vpop.f32.mrf.mxu0 }
 0x233   :  { %v1134_v57 = vadd.f32 %v1133_v16, %v1020_v32  ;;  %v1151_v63 = vpop.f32.mrf.mxu3  ;;  %v1571_v10 = vpop.f32.mrf.mxu1 }
 0x235   :  { %v1298_v60 = vadd.f32 %v1250_v33, %v1134_v57 }
 0x237   :  { %v1318_v36 = vadd.f32 %v2571_v6, %v1298_v60 }
 0x239   :  { %v1618_v27 = vadd.f32 %v1553_v20, %v1318_v36  ;;  %v1152_v20 = vadd.f32 %v1151_v63, %v2497_v12 }
 0x23a   :  { %v1253_v40 = vpop.f32.mrf.mxu0 }
 0x23b   :  { %1634 = vst [vmem:[%s2665_s13] sm:$0xff] %v1618_v27  ;;  %v1299_v41 = vadd.f32 %v1253_v40, %v1137_v62  ;;  %v1154_v44 = vpop.f32.mrf.mxu3  ;;  %v1574_v29 = vpop.f32.mrf.mxu1 }
 0x23c   :  { %v1155_v24 = vadd.f32 %v1154_v44, %v2510_v22 }
 0x23d   :  { %v1319_v42 = vadd.f32 %v2571_v6, %v1299_v41 }
 0x23f   :  { %v1619_v47 = vadd.f32 %v1556_v45, %v1319_v42 }
 0x241   :  { %1635 = vst [vmem:[%s2665_s13 + $0x8] sm:$0xff] %v1619_v47 }
 0x242   :  { %v1256_v2 = vpop.f32.mrf.mxu0 }
 0x243   :  { %v1300_v26 = vadd.f32 %v1256_v2, %v1140_v48  ;;  %v1157_v17 = vpop.f32.mrf.mxu3  ;;  %v1577_v45 = vpop.f32.mrf.mxu1 }
 0x245   :  { %v1320_v35 = vadd.f32 %v2571_v6, %v1300_v26 }
 0x247   :  { %v1620_v55 = vadd.f32 %v1559_v31, %v1320_v35  ;;  %v1158_v31 = vadd.f32 %v1157_v17, %v2525_v46 }
 0x249   :  { %1636 = vst [vmem:[%s2665_s13 + $0x10] sm:$0xff] %v1620_v55 }
 0x24a   :  { %v1259_v59 = vpop.f32.mrf.mxu0 }
 0x24b   :  { %v1301_v37 = vadd.f32 %v1259_v59, %v1143_v58  ;;  %v1160_v25 = vpop.f32.mrf.mxu3  ;;  %v1580_v57 = vpop.f32.mrf.mxu1 }
 0x24c   :  { %v1161_v36 = vadd.f32 %v1160_v25, %v2529_v49 }
 0x24d   :  { %v1321_v1 = vadd.f32 %v2571_v6, %v1301_v37 }
 0x24f   :  { %v1621_v50 = vadd.f32 %v1562_v39, %v1321_v1 }
 0x251   :  { %1637 = vst [vmem:[%s2665_s13 + $0x18] sm:$0xff] %v1621_v50 }
 0x252   :  { %v1262_v5 = vpop.f32.mrf.mxu0 }
 0x253   :  { %v1302_v7 = vadd.f32 %v1262_v5, %v1146_v56  ;;  %v1163_v22 = vpop.f32.mrf.mxu3  ;;  %v1583_v40 = vpop.f32.mrf.mxu1 }
 0x254   :  { %v1164_v42 = vadd.f32 %v1163_v22, %v2533_v52 }
 0x255   :  { %v1322_v8 = vadd.f32 %v2571_v6, %v1302_v7 }
 0x257   :  { %v1622_v11 = vadd.f32 %v1565_v51, %v1322_v8 }
 0x259   :  { %1638 = vst [vmem:[%s2665_s13 + $0x20] sm:$0xff] %v1622_v11 }
 0x25a   :  { %v1265_v14 = vpop.f32.mrf.mxu0 }
 0x25b   :  { %v1303_v16 = vadd.f32 %v1265_v14, %v1149_v13  ;;  %v1166_v27 = vpop.f32.mrf.mxu3  ;;  %v1586_v2 = vpop.f32.mrf.mxu1 }
 0x25c   :  { %v1167_v26 = vadd.f32 %v1166_v27, %v2538_v61 }
 0x25d   :  { %v1323_v53 = vadd.f32 %v2571_v6, %v1303_v16 }
 0x25f   :  { %v1623_v18 = vadd.f32 %v1568_v0, %v1323_v53 }
 0x261   :  { %1639 = vst [vmem:[%s2665_s13 + $0x28] sm:$0xff] %v1623_v18 }
 0x262   :  { %v1268_v21 = vpop.f32.mrf.mxu0 }
 0x263   :  { %v1304_v38 = vadd.f32 %v1268_v21, %v1152_v20  ;;  %v1169_v51 = vpop.f32.mrf.mxu3  ;;  %v1589_v59 = vpop.f32.mrf.mxu1 }
 0x264   :  { %v1170_v63 = vadd.f32 %v1169_v51, %v2543_v43 }
 0x265   :  { %v1324_v4 = vadd.f32 %v2571_v6, %v1304_v38 }
 0x267   :  { %v1624_v23 = vadd.f32 %v1571_v10, %v1324_v4 }
 0x269   :  { %1640 = vst [vmem:[%s2665_s13 + $0x30] sm:$0xff] %v1624_v23 }
 0x26a   :  { %v1271_v28 = vpop.f32.mrf.mxu0 }
 0x26b   :  { %v1305_v30 = vadd.f32 %v1271_v28, %v1155_v24  ;;  %v1172_v37 = vpop.f32.mrf.mxu3  ;;  %v1592_v5 = vpop.f32.mrf.mxu1 }
 0x26c   :  { %v1173_v56 = vadd.f32 %v1172_v37, %v2547_v3 }
 0x26d   :  { %v1325_v12 = vadd.f32 %v2571_v6, %v1305_v30 }
 0x26f   :  { %v1625_v54 = vadd.f32 %v1574_v29, %v1325_v12 }
 0x271   :  { %1641 = vst [vmem:[%s2665_s13 + $0x38] sm:$0xff] %v1625_v54 }
 0x272   :  { %v1274_v32 = vpop.f32.mrf.mxu0 }
 0x273   :  { %v1306_v33 = vadd.f32 %v1274_v32, %v1158_v31  ;;  %v1175_v43 = vpop.f32.mrf.mxu3  ;;  %v1595_v3 = vpop.f32.mrf.mxu1 }
 0x274   :  { %v1176_v11 = vadd.f32 %v1175_v43, %v2550_v9 }
 0x275   :  { %v1326_v60 = vadd.f32 %v2571_v6, %v1306_v33 }
 0x277   :  { %v1626_v19 = vadd.f32 %v1577_v45, %v1326_v60 }
 0x279   :  { %1642 = vst [vmem:[%s2665_s13 + $0x40] sm:$0xff] %v1626_v19 }
 0x27a   :  { %v1277_v39 = vpop.f32.mrf.mxu0 }
 0x27b   :  { %v1307_v62 = vadd.f32 %v1277_v39, %v1161_v36  ;;  %v1178_v53 = vpop.f32.mrf.mxu3  ;;  %v1598_v21 = vpop.f32.mrf.mxu1 }
 0x27c   :  { %v1179_v18 = vadd.f32 %v1178_v53, %v2555_v15 }
 0x27d   :  { %v1327_v46 = vadd.f32 %v2571_v6, %v1307_v62 }
 0x27f   :  { %v1627_v41 = vadd.f32 %v1580_v57, %v1327_v46 }
 0x281   :  { %1643 = vst [vmem:[%s2665_s13 + $0x48] sm:$0xff] %v1627_v41 }
 0x282   :  { %v1280_v47 = vpop.f32.mrf.mxu0 }
 0x283   :  { %v1308_v48 = vadd.f32 %v1280_v47, %v1164_v42 }
 0x285   :  { %v1328_v49 = vadd.f32 %v2571_v6, %v1308_v48 }
 0x287   :  { %v1628_v34 = vadd.f32 %v1583_v40, %v1328_v49 }
 0x289   :  { %1644 = vst [vmem:[%s2665_s13 + $0x50] sm:$0xff] %v1628_v34 }
 0x28a   :  { %v1283_v35 = vpop.f32.mrf.mxu0 }
 0x28b   :  { %v1309_v55 = vadd.f32 %v1283_v35, %v1167_v26 }
 0x28d   :  { %v1329_v52 = vadd.f32 %v2571_v6, %v1309_v55 }
 0x28f   :  { %v1629_v58 = vadd.f32 %v1586_v2, %v1329_v52 }
 0x291   :  { %1645 = vst [vmem:[%s2665_s13 + $0x58] sm:$0xff] %v1629_v58 }
 0x292   :  { %v1286_v0 = vpop.f32.mrf.mxu0 }
 0x293   :  { %v1310_v1 = vadd.f32 %v1286_v0, %v1170_v63 }
 0x295   :  { %v1330_v61 = vadd.f32 %v2571_v6, %v1310_v1 }
 0x297   :  { %v1630_v50 = vadd.f32 %v1589_v59, %v1330_v61 }
 0x299   :  { %1646 = vst [vmem:[%s2665_s13 + $0x60] sm:$0xff] %v1630_v50 }
 0x29a   :  { %v1289_v7 = vpop.f32.mrf.mxu0 }
 0x29b   :  { %v1311_v44 = vadd.f32 %v1289_v7, %v1173_v56 }
 0x29d   :  { %v1331_v8 = vadd.f32 %v2571_v6, %v1311_v44 }
 0x29f   :  { %v1631_v10 = vadd.f32 %v1592_v5, %v1331_v8 }
 0x2a1   :  { %1647 = vst [vmem:[%s2665_s13 + $0x68] sm:$0xff] %v1631_v10 }
 0x2a2   :  { %v1292_v13 = vpop.f32.mrf.mxu0 }
 0x2a3   :  { %v1312_v14 = vadd.f32 %v1292_v13, %v1176_v11 }
 0x2a5   :  { %v1332_v16 = vadd.f32 %v2571_v6, %v1312_v14 }
 0x2a7   :  { %v1632_v17 = vadd.f32 %v1595_v3, %v1332_v16 }
 0x2a9   :  { %1648 = vst [vmem:[%s2665_s13 + $0x70] sm:$0xff] %v1632_v17 }
 0x2aa   :  { %v1295_v29 = vpop.f32.mrf.mxu0 }
 0x2ab   :  { %v1313_v20 = vadd.f32 %v1295_v29, %v1179_v18 }
 0x2ad   :  { %v1333_v9 = vadd.f32 %v2571_v6, %v1313_v20 }
 0x2af   :  { %v1633_v38 = vadd.f32 %v1598_v21, %v1333_v9 }
 0x2b1   :  { %1649 = vst [vmem:[%s2665_s13 + $0x78] sm:$0xff] %v1633_v38 }

</bundles_post_ra>
